<compile_context>
chip_gen: v6e
topology: v6e:2x2x1
jax: 0.10.0
libtpu: 0.0.40
codegen_flags: <defaults>
</compile_context>

<pallas_src>
import functools

import jax
import jax.numpy as jnp
from jax.experimental import pallas as pl
from jax.experimental.pallas import tpu as pltpu


def _round_up(x, m):
    return (x + m - 1) // m * m


def _use_bf16_epilogue(device=None):
    """True on chips with packed-bf16 VALUs (v6e / v7x); False on <= v5."""
    try:
        kind = (device or jax.devices()[0]).device_kind.lower()
    except Exception:
        return False
    return not any(tag in kind for tag in ("v2", "v3", "v4", "v5"))


# ---------------------------------------------------------------------------
# Kernel
# ---------------------------------------------------------------------------
def _actor_kernel(ma_ref, x_ref, w1_ref, b1_ref, w2_ref, b2_ref,
                  w3_ref, b3_ref, out_ref, *, bf16_epilogue):
    ma = ma_ref[0, 0]                                   # f32 scalar from SMEM
    x = x_ref[...].astype(jnp.bfloat16)                 # [TB, S] (no-op if bf16)

    # Layer 1: Linear(S, 512pad) + ReLU      (bf16 MXU, f32 accumulate)
    h1 = jnp.dot(x, w1_ref[...], preferred_element_type=jnp.float32)
    if bf16_epilogue:
        # Packed-bf16 epilogue: one f32->bf16 cast, then add+relu at 2x VPU rate.
        h1 = jnp.maximum(h1.astype(jnp.bfloat16)
                         + b1_ref[...].astype(jnp.bfloat16), 0.0)
    else:
        h1 = jnp.maximum(h1 + b1_ref[...], 0.0).astype(jnp.bfloat16)

    # Layer 2: Linear(512pad, 384pad) + ReLU
    h2 = jnp.dot(h1, w2_ref[...], preferred_element_type=jnp.float32)
    if bf16_epilogue:
        h2 = jnp.maximum(h2.astype(jnp.bfloat16)
                         + b2_ref[...].astype(jnp.bfloat16), 0.0)
    else:
        h2 = jnp.maximum(h2 + b2_ref[...], 0.0).astype(jnp.bfloat16)

    # Layer 3: Linear(384pad, A), then max_action * tanh (f32 elementwise/EUP)
    y = jnp.dot(h2, w3_ref[...], preferred_element_type=jnp.float32) + b3_ref[...]
    out_ref[...] = (ma * jnp.tanh(y)).astype(out_ref.dtype)


# ---------------------------------------------------------------------------
# pallas_call builder
# ---------------------------------------------------------------------------
def _build_call(TB, Bp, S, H1, H2, A, x_dtype, bf16_epilogue,
                single_buffer_weights):
    const = lambda i: (0, 0)          # weights/biases: VMEM-resident, one DMA

    def wspec(shape):
        if single_buffer_weights:
            return pl.BlockSpec(shape, const, pipeline_mode=pl.Buffered(1))
        return pl.BlockSpec(shape, const)

    itemsize = jnp.dtype(x_dtype).itemsize
    cost = pl.CostEstimate(
        flops=2 * Bp * (S * H1 + H1 * H2 + H2 * A),
        transcendentals=Bp * A,                                  # tanh
        bytes_accessed=(2 * (S * H1 + H1 * H2 + H2 * A)          # bf16 weights
                        + 4 * (H1 + H2 + A)                      # f32 biases
                        + Bp * S * itemsize + Bp * A * 4),       # x in, out
    )

    return pl.pallas_call(
        functools.partial(_actor_kernel, bf16_epilogue=bf16_epilogue),
        out_shape=jax.ShapeDtypeStruct((Bp, A), jnp.float32),
        grid_spec=pltpu.PrefetchScalarGridSpec(
            num_scalar_prefetch=0,
            grid=(Bp // TB,),
            in_specs=[
                pl.BlockSpec((1, 1), const,
                             memory_space=pltpu.MemorySpace.SMEM),  # max_action
                pl.BlockSpec((TB, S), lambda i: (i, 0)),            # x tile
                wspec((S, H1)),                                     # w1 (bf16)
                wspec((1, H1)),                                     # b1 (f32)
                wspec((H1, H2)),                                    # w2 (bf16)
                wspec((1, H2)),                                     # b2 (f32)
                wspec((H2, A)),                                     # w3 (bf16)
                wspec((1, A)),                                      # b3 (f32)
            ],
            out_specs=pl.BlockSpec((TB, A), lambda i: (i, 0)),
        ),
        compiler_params=pltpu.CompilerParams(
            dimension_semantics=("parallel",),        # v7x: shard across 2 TCs
            vmem_limit_bytes=32 * 1024 * 1024,        # v5e guard for big tiles
        ),
        cost_estimate=cost,
    )


_SINGLE_BUFFER_WEIGHTS = True   # flipped off once if Buffered(1) is rejected


# ---------------------------------------------------------------------------
# Wrapper
# ---------------------------------------------------------------------------
def actor_forward(x, prepared, max_action, *, batch_tile=2048,
                  bf16_epilogue=None):
    """x: [B, state_dim] float32 (bf16 also accepted).
    prepared: output of prepare_actor_params."""
    global _SINGLE_BUFFER_WEIGHTS

    B, S = x.shape
    H1 = prepared["w1"].shape[1]          # 512 (padded 400)
    H2 = prepared["w2"].shape[1]          # 384 (padded 300)
    A = prepared["w3"].shape[1]           # action_dim (not padded)

    if bf16_epilogue is None:
        bf16_epilogue = _use_bf16_epilogue()

    # --- batch tile / grid: multiple of 8, capped at batch_tile, and >= 2 grid
    # steps whenever the batch allows it (so v7x uses both TensorCores).
    Bp8 = _round_up(max(B, 1), 8)
    n_steps = max(1, -(-Bp8 // batch_tile))
    if Bp8 >= 16:
        n_steps = max(n_steps, 2)
    TB = _round_up(-(-Bp8 // n_steps), 8)
    Bp = n_steps * TB

    if Bp != B:
        x = jnp.pad(x, ((0, Bp - B), (0, 0)))

    ma = jnp.full((1, 1), max_action, dtype=jnp.float32)
    args = (ma, x, prepared["w1"], prepared["b1"], prepared["w2"],
            prepared["b2"], prepared["w3"], prepared["b3"])

    if _SINGLE_BUFFER_WEIGHTS:
        try:
            out = _build_call(TB, Bp, S, H1, H2, A, x.dtype, bf16_epilogue,
                              single_buffer_weights=True)(*args)
        except Exception:
            # This JAX build rejected Buffered(1); fall back to default
            # double-buffering (correctness identical, slightly more VMEM).
            _SINGLE_BUFFER_WEIGHTS = False
            out = _build_call(TB, Bp, S, H1, H2, A, x.dtype, bf16_epilogue,
                              single_buffer_weights=False)(*args)
    else:
        out = _build_call(TB, Bp, S, H1, H2, A, x.dtype, bf16_epilogue,
                          single_buffer_weights=False)(*args)
    return out[:B]


# ---------------------------------------------------------------------------
# Params: PyTorch-default init (unpadded f32) + one-time prepare (pad + bf16)
# ---------------------------------------------------------------------------
def init_actor_params(key, state_dim, action_dim):
    """PyTorch-default-style init (uniform +/- 1/sqrt(fan_in)).
    Weights stored already transposed: [in_features, out_features], f32."""
    ks = jax.random.split(key, 6)

    def lin(kw, kb, fan_in, fan_out):
        bound = 1.0 / jnp.sqrt(float(fan_in))
        w = jax.random.uniform(kw, (fan_in, fan_out), jnp.float32, -bound, bound)
        b = jax.random.uniform(kb, (1, fan_out), jnp.float32, -bound, bound)
        return w, b

    w1, b1 = lin(ks[0], ks[1], state_dim, 400)
    w2, b2 = lin(ks[2], ks[3], 400, 300)
    w3, b3 = lin(ks[4], ks[5], 300, action_dim)
    return {"w1": w1, "b1": b1, "w2": w2, "b2": b2, "w3": w3, "b3": b3}


def prepare_actor_params(params):
    """One-time: zero-pad hidden dims to multiples of 128 and cast weights to
    bf16 (biases stay f32; the bf16 epilogue casts the tiny (1,H) biases
    in-kernel).  Padding is exact (zeros), so the forward pass equals the
    unpadded network up to bf16 rounding.  H2 intentionally stays 384."""
    S = params["w1"].shape[0]
    A = params["w3"].shape[1]
    H1 = _round_up(params["w1"].shape[1], 128)   # 400 -> 512
    H2 = _round_up(params["w2"].shape[1], 128)   # 300 -> 384

    def pad_to(a, shape):
        return jnp.pad(a, [(0, t - s) for s, t in zip(a.shape, shape)])

    return {
        "w1": pad_to(params["w1"], (S, H1)).astype(jnp.bfloat16),
        "b1": pad_to(params["b1"], (1, H1)).astype(jnp.float32),
        "w2": pad_to(params["w2"], (H1, H2)).astype(jnp.bfloat16),
        "b2": pad_to(params["b2"], (1, H2)).astype(jnp.float32),
        "w3": pad_to(params["w3"], (H2, A)).astype(jnp.bfloat16),
        "b3": params["b3"].astype(jnp.float32),
    }


# ---------------------------------------------------------------------------
# References
# ---------------------------------------------------------------------------
def actor_reference_f32(x, params, max_action):
    """Original PyTorch-semantics forward, full f32, unpadded params."""
    h1 = jnp.maximum(x @ params["w1"] + params["b1"], 0.0)
    h2 = jnp.maximum(h1 @ params["w2"] + params["b2"], 0.0)
    return max_action * jnp.tanh(h2 @ params["w3"] + params["b3"])


def actor_reference_mirrored(x, prepared, max_action, bf16_epilogue):
    """Mirrors the kernel's mixed-precision recipe exactly (tight check)."""
    f32, bf = jnp.float32, jnp.bfloat16
    h1 = jnp.dot(x.astype(bf), prepared["w1"], preferred_element_type=f32)
    if bf16_epilogue:
        h1 = jnp.maximum(h1.astype(bf) + prepared["b1"].astype(bf), 0.0)
    else:
        h1 = jnp.maximum(h1 + prepared["b1"], 0.0).astype(bf)
    h2 = jnp.dot(h1, prepared["w2"], preferred_element_type=f32)
    if bf16_epilogue:
        h2 = jnp.maximum(h2.astype(bf) + prepared["b2"].astype(bf), 0.0)
    else:
        h2 = jnp.maximum(h2 + prepared["b2"], 0.0).astype(bf)
    y = jnp.dot(h2, prepared["w3"], preferred_element_type=f32) + prepared["b3"]
    return max_action * jnp.tanh(y)


# ---------------------------------------------------------------------------
if __name__ == "__main__":
    # Small shapes consistent with a gym continuous-control env.
    batch, state_dim, action_dim = 2, 8, 2
    max_action = 2.0

    key = jax.random.PRNGKey(0)
    k_params, k_x = jax.random.split(key)
    params = init_actor_params(k_params, state_dim, action_dim)
    prepared = prepare_actor_params(params)
    x = jax.random.normal(k_x, (batch, state_dim), jnp.float32)

    bf16_ep = _use_bf16_epilogue()

    # Tiny batch (single grid step).
    out = jax.block_until_ready(actor_forward(x, prepared, max_action))
    assert out.shape == (batch, action_dim)

    ref_tight = actor_reference_mirrored(x, prepared, max_action, bf16_ep)
    assert jnp.allclose(out, ref_tight, atol=5e-3, rtol=5e-3), \
        "mismatch vs precision-mirrored reference"

    ref_f32 = actor_reference_f32(x, params, max_action)
    assert jnp.allclose(out, ref_f32, atol=5e-2, rtol=5e-2), \
        "mismatch vs f32 reference"

    # Larger batch: exercises >= 2 grid steps (v7x both-TC path) + batch pad.
    xb = jax.random.normal(jax.random.PRNGKey(1), (300, state_dim), jnp.float32)
    outb = jax.block_until_ready(actor_forward(xb, prepared, max_action))
    refb = actor_reference_mirrored(xb, prepared, max_action, bf16_ep)
    assert outb.shape == (300, action_dim)
    assert jnp.allclose(outb, refb, atol=5e-3, rtol=5e-3), \
        "multi-tile mismatch vs precision-mirrored reference"

    print("KERNEL_OK")
</pallas_src>

<mosaic_0001>
module attributes {stable_mosaic.version = 11 : i64} {
  func.func @_actor_kernel(%arg0: i32, %arg1: memref<1x1xf32, #tpu.memory_space<smem>>, %arg2: memref<8x8xf32, #tpu.memory_space<vmem>>, %arg3: memref<8x512xbf16, #tpu.memory_space<vmem>>, %arg4: memref<1x512xf32, #tpu.memory_space<vmem>>, %arg5: memref<512x384xbf16, #tpu.memory_space<vmem>>, %arg6: memref<1x384xf32, #tpu.memory_space<vmem>>, %arg7: memref<384x2xbf16, #tpu.memory_space<vmem>>, %arg8: memref<1x2xf32, #tpu.memory_space<vmem>>, %arg9: memref<8x2xf32, #tpu.memory_space<vmem>>) attributes {dimension_semantics = [#tpu.dimension_semantics<parallel>], iteration_bounds = array<i64: 1>, scalar_prefetch = 0 : i64, scratch_operands = 0 : i64, tpu.core_type = #tpu.core_type<tc>, window_params = [{transform_indices = @transform_0, window_bounds = array<i64: 1, 1>}, {transform_indices = @transform_1, window_bounds = array<i64: 8, 8>}, {pipeline_mode = #tpu.pipeline_mode<synchronous>, transform_indices = @transform_2, window_bounds = array<i64: 8, 512>}, {pipeline_mode = #tpu.pipeline_mode<synchronous>, transform_indices = @transform_3, window_bounds = array<i64: 1, 512>}, {pipeline_mode = #tpu.pipeline_mode<synchronous>, transform_indices = @transform_4, window_bounds = array<i64: 512, 384>}, {pipeline_mode = #tpu.pipeline_mode<synchronous>, transform_indices = @transform_5, window_bounds = array<i64: 1, 384>}, {pipeline_mode = #tpu.pipeline_mode<synchronous>, transform_indices = @transform_6, window_bounds = array<i64: 384, 2>}, {pipeline_mode = #tpu.pipeline_mode<synchronous>, transform_indices = @transform_7, window_bounds = array<i64: 1, 2>}, {transform_indices = @transform_8, window_bounds = array<i64: 8, 2>}]} {
    %c0 = arith.constant 0 : index
    %c0_0 = arith.constant 0 : index
    %0 = memref.load %arg1[%c0, %c0_0] : memref<1x1xf32, #tpu.memory_space<smem>>
    %c0_1 = arith.constant 0 : index
    %c0_2 = arith.constant 0 : index
    %1 = vector.load %arg2[%c0_1, %c0_2] : memref<8x8xf32, #tpu.memory_space<vmem>>, vector<8x8xf32>
    %2 = arith.truncf %1 : vector<8x8xf32> to vector<8x8xbf16>
    %c0_3 = arith.constant 0 : index
    %c0_4 = arith.constant 0 : index
    %3 = vector.load %arg3[%c0_3, %c0_4] : memref<8x512xbf16, #tpu.memory_space<vmem>>, vector<8x512xbf16>
    %cst = arith.constant dense<0.000000e+00> : vector<8x512xf32>
    %4 = tpu.matmul %2, %3, %cst {dimension_numbers = #tpu.dot_dimension_numbers<[1], [0], [0], [1], [0, 0, 1, 1], [], []>} : vector<8x8xbf16>, vector<8x512xbf16>, vector<8x512xf32> -> vector<8x512xf32>
    %5 = arith.truncf %4 : vector<8x512xf32> to vector<8x512xbf16>
    %c0_5 = arith.constant 0 : index
    %c0_6 = arith.constant 0 : index
    %6 = vector.load %arg4[%c0_5, %c0_6] : memref<1x512xf32, #tpu.memory_space<vmem>>, vector<1x512xf32>
    %7 = arith.truncf %6 : vector<1x512xf32> to vector<1x512xbf16>
    %8 = vector.broadcast %7 : vector<1x512xbf16> to vector<8x512xbf16>
    %9 = arith.addf %5, %8 : vector<8x512xbf16>
    %cst_7 = arith.constant 0.000000e+00 : bf16
    %10 = vector.broadcast %cst_7 : bf16 to vector<8x512xbf16>
    %11 = arith.maximumf %9, %10 : vector<8x512xbf16>
    %c0_8 = arith.constant 0 : index
    %c0_9 = arith.constant 0 : index
    %12 = vector.load %arg5[%c0_8, %c0_9] : memref<512x384xbf16, #tpu.memory_space<vmem>>, vector<512x384xbf16>
    %cst_10 = arith.constant dense<0.000000e+00> : vector<8x384xf32>
    %13 = tpu.matmul %11, %12, %cst_10 {dimension_numbers = #tpu.dot_dimension_numbers<[1], [0], [0], [1], [0, 0, 1, 1], [], []>} : vector<8x512xbf16>, vector<512x384xbf16>, vector<8x384xf32> -> vector<8x384xf32>
    %14 = arith.truncf %13 : vector<8x384xf32> to vector<8x384xbf16>
    %c0_11 = arith.constant 0 : index
    %c0_12 = arith.constant 0 : index
    %15 = vector.load %arg6[%c0_11, %c0_12] : memref<1x384xf32, #tpu.memory_space<vmem>>, vector<1x384xf32>
    %16 = arith.truncf %15 : vector<1x384xf32> to vector<1x384xbf16>
    %17 = vector.broadcast %16 : vector<1x384xbf16> to vector<8x384xbf16>
    %18 = arith.addf %14, %17 : vector<8x384xbf16>
    %cst_13 = arith.constant 0.000000e+00 : bf16
    %19 = vector.broadcast %cst_13 : bf16 to vector<8x384xbf16>
    %20 = arith.maximumf %18, %19 : vector<8x384xbf16>
    %c0_14 = arith.constant 0 : index
    %c0_15 = arith.constant 0 : index
    %21 = vector.load %arg7[%c0_14, %c0_15] : memref<384x2xbf16, #tpu.memory_space<vmem>>, vector<384x2xbf16>
    %cst_16 = arith.constant dense<0.000000e+00> : vector<8x2xf32>
    %22 = tpu.matmul %20, %21, %cst_16 {dimension_numbers = #tpu.dot_dimension_numbers<[1], [0], [0], [1], [0, 0, 1, 1], [], []>} : vector<8x384xbf16>, vector<384x2xbf16>, vector<8x2xf32> -> vector<8x2xf32>
    %c0_17 = arith.constant 0 : index
    %c0_18 = arith.constant 0 : index
    %23 = vector.load %arg8[%c0_17, %c0_18] : memref<1x2xf32, #tpu.memory_space<vmem>>, vector<1x2xf32>
    %24 = vector.broadcast %23 : vector<1x2xf32> to vector<8x2xf32>
    %25 = arith.addf %22, %24 : vector<8x2xf32>
    %26 = math.tanh %25 : vector<8x2xf32>
    %27 = vector.broadcast %0 : f32 to vector<8x2xf32>
    %28 = arith.mulf %27, %26 : vector<8x2xf32>
    %c0_19 = arith.constant 0 : index
    %c0_20 = arith.constant 0 : index
    %29 = vector.load %arg9[%c0_19, %c0_20] : memref<8x2xf32, #tpu.memory_space<vmem>>, vector<8x2xf32>
    tpu.vector_store %arg9[%c0_19, %c0_20], %28 {strides = array<i32>} : memref<8x2xf32, #tpu.memory_space<vmem>>, vector<8x2xf32>,
    return
  }
  func.func @transform_0(%arg0: i32) -> (i32, i32) {
    %c0_i32 = arith.constant 0 : i32
    %c0_i32_0 = arith.constant 0 : i32
    %c0_i32_1 = arith.constant 0 : i32
    return %c0_i32, %c0_i32_0 : i32, i32
  }
  func.func @transform_1(%arg0: i32) -> (i32, i32) {
    %c0_i32 = arith.constant 0 : i32
    %c0_i32_0 = arith.constant 0 : i32
    return %arg0, %c0_i32 : i32, i32
  }
  func.func @transform_2(%arg0: i32) -> (i32, i32) {
    %c0_i32 = arith.constant 0 : i32
    %c0_i32_0 = arith.constant 0 : i32
    %c0_i32_1 = arith.constant 0 : i32
    return %c0_i32, %c0_i32_0 : i32, i32
  }
  func.func @transform_3(%arg0: i32) -> (i32, i32) {
    %c0_i32 = arith.constant 0 : i32
    %c0_i32_0 = arith.constant 0 : i32
    %c0_i32_1 = arith.constant 0 : i32
    return %c0_i32, %c0_i32_0 : i32, i32
  }
  func.func @transform_4(%arg0: i32) -> (i32, i32) {
    %c0_i32 = arith.constant 0 : i32
    %c0_i32_0 = arith.constant 0 : i32
    %c0_i32_1 = arith.constant 0 : i32
    return %c0_i32, %c0_i32_0 : i32, i32
  }
  func.func @transform_5(%arg0: i32) -> (i32, i32) {
    %c0_i32 = arith.constant 0 : i32
    %c0_i32_0 = arith.constant 0 : i32
    %c0_i32_1 = arith.constant 0 : i32
    return %c0_i32, %c0_i32_0 : i32, i32
  }
  func.func @transform_6(%arg0: i32) -> (i32, i32) {
    %c0_i32 = arith.constant 0 : i32
    %c0_i32_0 = arith.constant 0 : i32
    %c0_i32_1 = arith.constant 0 : i32
    return %c0_i32, %c0_i32_0 : i32, i32
  }
  func.func @transform_7(%arg0: i32) -> (i32, i32) {
    %c0_i32 = arith.constant 0 : i32
    %c0_i32_0 = arith.constant 0 : i32
    %c0_i32_1 = arith.constant 0 : i32
    return %c0_i32, %c0_i32_0 : i32, i32
  }
  func.func @transform_8(%arg0: i32) -> (i32, i32) {
    %c0_i32 = arith.constant 0 : i32
    %c0_i32_0 = arith.constant 0 : i32
    return %arg0, %c0_i32 : i32, i32
  }
}

module attributes {stable_mosaic.version = 11 : i64} {
  func.func @_actor_kernel(%arg0: i32, %arg1: memref<1x1xf32, #tpu.memory_space<smem>>, %arg2: memref<8x8xf32, #tpu.memory_space<vmem>>, %arg3: memref<8x512xbf16, #tpu.memory_space<vmem>>, %arg4: memref<1x512xf32, #tpu.memory_space<vmem>>, %arg5: memref<512x384xbf16, #tpu.memory_space<vmem>>, %arg6: memref<1x384xf32, #tpu.memory_space<vmem>>, %arg7: memref<384x2xbf16, #tpu.memory_space<vmem>>, %arg8: memref<1x2xf32, #tpu.memory_space<vmem>>, %arg9: memref<8x2xf32, #tpu.memory_space<vmem>>) attributes {dimension_semantics = [#tpu.dimension_semantics<parallel>], iteration_bounds = array<i64: 1>, scalar_prefetch = 0 : i64, scratch_operands = 0 : i64, tpu.core_type = #tpu.core_type<tc>, window_params = [{transform_indices = @transform_0, window_bounds = array<i64: 1, 1>}, {transform_indices = @transform_1, window_bounds = array<i64: 8, 8>}, {pipeline_mode = #tpu.pipeline_mode<synchronous>, transform_indices = @transform_2, window_bounds = array<i64: 8, 512>}, {pipeline_mode = #tpu.pipeline_mode<synchronous>, transform_indices = @transform_3, window_bounds = array<i64: 1, 512>}, {pipeline_mode = #tpu.pipeline_mode<synchronous>, transform_indices = @transform_4, window_bounds = array<i64: 512, 384>}, {pipeline_mode = #tpu.pipeline_mode<synchronous>, transform_indices = @transform_5, window_bounds = array<i64: 1, 384>}, {pipeline_mode = #tpu.pipeline_mode<synchronous>, transform_indices = @transform_6, window_bounds = array<i64: 384, 2>}, {pipeline_mode = #tpu.pipeline_mode<synchronous>, transform_indices = @transform_7, window_bounds = array<i64: 1, 2>}, {transform_indices = @transform_8, window_bounds = array<i64: 8, 2>}]} {
    %c0 = arith.constant 0 : index
    %c0_0 = arith.constant 0 : index
    %0 = memref.load %arg1[%c0, %c0_0] : memref<1x1xf32, #tpu.memory_space<smem>>
    %c0_1 = arith.constant 0 : index
    %c0_2 = arith.constant 0 : index
    %1 = vector.load %arg2[%c0_1, %c0_2] : memref<8x8xf32, #tpu.memory_space<vmem>>, vector<8x8xf32>
    %2 = arith.truncf %1 : vector<8x8xf32> to vector<8x8xbf16>
    %c0_3 = arith.constant 0 : index
    %c0_4 = arith.constant 0 : index
    %3 = vector.load %arg3[%c0_3, %c0_4] : memref<8x512xbf16, #tpu.memory_space<vmem>>, vector<8x512xbf16>
    %cst = arith.constant dense<0.000000e+00> : vector<8x512xf32>
    %4 = tpu.matmul %2, %3, %cst {dimension_numbers = #tpu.dot_dimension_numbers<[1], [0], [0], [1], [0, 0, 1, 1], [], []>} : vector<8x8xbf16>, vector<8x512xbf16>, vector<8x512xf32> -> vector<8x512xf32>
    %5 = arith.truncf %4 : vector<8x512xf32> to vector<8x512xbf16>
    %c0_5 = arith.constant 0 : index
    %c0_6 = arith.constant 0 : index
    %6 = vector.load %arg4[%c0_5, %c0_6] : memref<1x512xf32, #tpu.memory_space<vmem>>, vector<1x512xf32>
    %7 = arith.truncf %6 : vector<1x512xf32> to vector<1x512xbf16>
    %8 = vector.broadcast %7 : vector<1x512xbf16> to vector<8x512xbf16>
    %9 = arith.addf %5, %8 : vector<8x512xbf16>
    %cst_7 = arith.constant 0.000000e+00 : bf16
    %10 = vector.broadcast %cst_7 : bf16 to vector<8x512xbf16>
    %11 = arith.maximumf %9, %10 : vector<8x512xbf16>
    %c0_8 = arith.constant 0 : index
    %c0_9 = arith.constant 0 : index
    %12 = vector.load %arg5[%c0_8, %c0_9] : memref<512x384xbf16, #tpu.memory_space<vmem>>, vector<512x384xbf16>
    %cst_10 = arith.constant dense<0.000000e+00> : vector<8x384xf32>
    %13 = tpu.matmul %11, %12, %cst_10 {dimension_numbers = #tpu.dot_dimension_numbers<[1], [0], [0], [1], [0, 0, 1, 1], [], []>} : vector<8x512xbf16>, vector<512x384xbf16>, vector<8x384xf32> -> vector<8x384xf32>
    %14 = arith.truncf %13 : vector<8x384xf32> to vector<8x384xbf16>
    %c0_11 = arith.constant 0 : index
    %c0_12 = arith.constant 0 : index
    %15 = vector.load %arg6[%c0_11, %c0_12] : memref<1x384xf32, #tpu.memory_space<vmem>>, vector<1x384xf32>
    %16 = arith.truncf %15 : vector<1x384xf32> to vector<1x384xbf16>
    %17 = vector.broadcast %16 : vector<1x384xbf16> to vector<8x384xbf16>
    %18 = arith.addf %14, %17 : vector<8x384xbf16>
    %cst_13 = arith.constant 0.000000e+00 : bf16
    %19 = vector.broadcast %cst_13 : bf16 to vector<8x384xbf16>
    %20 = arith.maximumf %18, %19 : vector<8x384xbf16>
    %c0_14 = arith.constant 0 : index
    %c0_15 = arith.constant 0 : index
    %21 = vector.load %arg7[%c0_14, %c0_15] : memref<384x2xbf16, #tpu.memory_space<vmem>>, vector<384x2xbf16>
    %cst_16 = arith.constant dense<0.000000e+00> : vector<8x2xf32>
    %22 = tpu.matmul %20, %21, %cst_16 {dimension_numbers = #tpu.dot_dimension_numbers<[1], [0], [0], [1], [0, 0, 1, 1], [], []>} : vector<8x384xbf16>, vector<384x2xbf16>, vector<8x2xf32> -> vector<8x2xf32>
    %c0_17 = arith.constant 0 : index
    %c0_18 = arith.constant 0 : index
    %23 = vector.load %arg8[%c0_17, %c0_18] : memref<1x2xf32, #tpu.memory_space<vmem>>, vector<1x2xf32>
    %24 = vector.broadcast %23 : vector<1x2xf32> to vector<8x2xf32>
    %25 = arith.addf %22, %24 : vector<8x2xf32>
    %26 = math.tanh %25 : vector<8x2xf32>
    %27 = vector.broadcast %0 : f32 to vector<8x2xf32>
    %28 = arith.mulf %27, %26 : vector<8x2xf32>
    %c0_19 = arith.constant 0 : index
    %c0_20 = arith.constant 0 : index
    %29 = vector.load %arg9[%c0_19, %c0_20] : memref<8x2xf32, #tpu.memory_space<vmem>>, vector<8x2xf32>
    tpu.vector_store %arg9[%c0_19, %c0_20], %28 {strides = array<i32>} : memref<8x2xf32, #tpu.memory_space<vmem>>, vector<8x2xf32>,
    return
  }
  func.func @transform_0(%arg0: i32) -> (i32, i32) {
    %c0_i32 = arith.constant 0 : i32
    %c0_i32_0 = arith.constant 0 : i32
    %c0_i32_1 = arith.constant 0 : i32
    return %c0_i32, %c0_i32_0 : i32, i32
  }
  func.func @transform_1(%arg0: i32) -> (i32, i32) {
    %c0_i32 = arith.constant 0 : i32
    %c0_i32_0 = arith.constant 0 : i32
    return %arg0, %c0_i32 : i32, i32
  }
  func.func @transform_2(%arg0: i32) -> (i32, i32) {
    %c0_i32 = arith.constant 0 : i32
    %c0_i32_0 = arith.constant 0 : i32
    %c0_i32_1 = arith.constant 0 : i32
    return %c0_i32, %c0_i32_0 : i32, i32
  }
  func.func @transform_3(%arg0: i32) -> (i32, i32) {
    %c0_i32 = arith.constant 0 : i32
    %c0_i32_0 = arith.constant 0 : i32
    %c0_i32_1 = arith.constant 0 : i32
    return %c0_i32, %c0_i32_0 : i32, i32
  }
  func.func @transform_4(%arg0: i32) -> (i32, i32) {
    %c0_i32 = arith.constant 0 : i32
    %c0_i32_0 = arith.constant 0 : i32
    %c0_i32_1 = arith.constant 0 : i32
    return %c0_i32, %c0_i32_0 : i32, i32
  }
  func.func @transform_5(%arg0: i32) -> (i32, i32) {
    %c0_i32 = arith.constant 0 : i32
    %c0_i32_0 = arith.constant 0 : i32
    %c0_i32_1 = arith.constant 0 : i32
    return %c0_i32, %c0_i32_0 : i32, i32
  }
  func.func @transform_6(%arg0: i32) -> (i32, i32) {
    %c0_i32 = arith.constant 0 : i32
    %c0_i32_0 = arith.constant 0 : i32
    %c0_i32_1 = arith.constant 0 : i32
    return %c0_i32, %c0_i32_0 : i32, i32
  }
  func.func @transform_7(%arg0: i32) -> (i32, i32) {
    %c0_i32 = arith.constant 0 : i32
    %c0_i32_0 = arith.constant 0 : i32
    %c0_i32_1 = arith.constant 0 : i32
    return %c0_i32, %c0_i32_0 : i32, i32
  }
  func.func @transform_8(%arg0: i32) -> (i32, i32) {
    %c0_i32 = arith.constant 0 : i32
    %c0_i32_0 = arith.constant 0 : i32
    return %arg0, %c0_i32 : i32, i32
  }
}

</mosaic_0001>

<bundles_post_ra>
// kernel: tpu_custom_call.1
= control target key start
LH: loop header
LB: loop body
LE: loop exit
PB: predicated region body
PF: predicated region fallthrough
CT: control target
= control target key end

     0   :  { %14 = vsyncpa [#allocation4], 0  ;;  %s1776_s27 = smov [#allocation3]   ;;  %s1968_s0 = inlined_call_operand.<no memory space> [shape: f32[1,1], index: 0, kind: input, shape index: {}]   ;;  %s1969_s1 = inlined_call_operand.vmem [shape: f32[8,8], index: 1, kind: input, shape index: {}]   ;;  %s1970_s2 = inlined_call_operand.vmem [shape: bf16[8,512], index: 2, kind: input, shape index: {}]   ;;  %s1971_s3 = inlined_call_operand.vmem [shape: f32[1,512], index: 3, kind: input, shape index: {}]   ;;  %s1972_s4 = inlined_call_operand.hbm [shape: bf16[512,384], index: 4, kind: input, shape index: {}]   ;;  %s1973_s5 = inlined_call_operand.vmem [shape: f32[1,384], index: 5, kind: input, shape index: {}]   ;;  %s1974_s6 = inlined_call_operand.vmem [shape: bf16[384,2], index: 6, kind: input, shape index: {}]   ;;  %s1975_s7 = inlined_call_operand.vmem [shape: f32[1,2], index: 7, kind: input, shape index: {}]   ;;  %s1976_s8 = inlined_call_operand.vmem [shape: f32[8,2], index: 8, kind: output, shape index: {}]  }
   0x1   :  { %s28_s28 = sshll.u32 %s1776_s27, 4  ;;  %s29_s28 = int_to_ptr.vmem [resolvable:$true] %s28_s28 }
   0x2   :  { %s1762_s29 = scalar_lea.vmem %s29_s28, 12288  ;;  %p1767_p1 = scmp.lt.s32.totalorder %s29_s28, %s29_s28 }
   0x3   :  { %p1763_p0 = scmp.ne.s32.totalorder %s29_s28, %s1762_s29  ;;  %p1768_p2 = scmp.lt.s32.totalorder %s1762_s29, %s1762_s29 }
   0x5   :  { %p1769_p3 = por %p1768_p2, %p1767_p1 }
   0x7   :  { %p1770_p4 = pnand %p1769_p3, %p1763_p0 }
   0x9   :  { %1773 = shalt.err (!%p1770_p4)
}
   0xa   :  { %s1777_s30 = smov 192   ;;  %s1778_s9 = smov 12  }
   0xb   :  { %34 = dma.hbm_to_vmem [thread:$0]  %s1972_s4, 12288, %s29_s28, [#allocation4], %s1777_s30, %s1777_s30, %s1778_s9  }
   0xc   :  { %1774 = dma.done.wait [#allocation4], 12288  }
   0xd   :  { %1775 = vsyncadd [#allocation4], 4294955008  ;;  %v1779_v0 = vmov 0   ;;  %v48_v1 = vld [vmem:[%s1970_s2] sm:$0xff]  ;;  %vm64_vm0 = vcmask 1043456   ;;  %v49_v2 = vld [vmem:[%s1970_s2 + $0x8] sm:$0xff] }
   0xe   :  { %109 = vmatprep.mubr.bf16.mxu0 %v1779_v0  ;;  %150 = vmatprep.mubr.bf16.mxu1 %v1779_v0  ;;  %v46_v3 = vld [vmem:[%s1969_s1] sm:$0xff]  ;;  %v1367_v4 = vcombine.high %v48_v1, %v48_v1  ;;  %v1369_v5 = vcombine.high %v49_v2, %v49_v2  ;;  %v1366_v6 = vcombine.low %v48_v1, %v48_v1  ;;  %v1602_v8 = vld [vmem:[#allocation3 + $0xac] ss:$12 sps:$4 sm:$0xff]   ;;  %v1600_v12 = vld [vmem:[#allocation3 + $0xa8] ss:$12 sps:$4 sm:$0xff]   ;;  %vm60_vm1 = vcmask 64512  }
   0xf   :  { %v1368_v7 = vcombine.low %v49_v2, %v49_v2  ;;  %v47_v11 = vpack.c.bf16 %v46_v3, %v46_v3  ;;  %v1605_v13 = vld [vmem:[#allocation3 + $0x22c] ss:$12 sps:$4 sm:$0xff]   ;;  %v1603_v14 = vld [vmem:[#allocation3 + $0x228] ss:$12 sps:$4 sm:$0xff]   ;;  %v1606_v17 = vld [vmem:[#allocation3 + $0x90] ss:$12 sps:$4 sm:$0xff]  }
  0x10   :  { %1370 = vmatprep.subr.msk.bf16.mxu0 %vm64_vm0, %v1367_v4  ;;  %1372 = vmatprep.subr.msk.bf16.mxu1 %vm64_vm0, %v1369_v5  ;;  %v66_v9 = vsel %vm64_vm0, %v1366_v6, 0  ;;  %v1608_v15 = vld [vmem:[#allocation3 + $0x94] ss:$12 sps:$4 sm:$0xff]   ;;  %v1609_v18 = vld [vmem:[#allocation3 + $0x210] ss:$12 sps:$4 sm:$0xff]   ;;  %vm1781_vm2 = vmmov 0  }
  0x11   :  { %v72_v10 = vsel %vm64_vm0, %v1368_v7, 0  ;;  %92 = vmatpush1.bf16.msra.mxu0 %v66_v9  ;;  %v1611_v16 = vld [vmem:[#allocation3 + $0x214] ss:$12 sps:$4 sm:$0xff]   ;;  %v1614_v19 = vld [vmem:[#allocation3 + $0x7c] ss:$12 sps:$4 sm:$0xff]   ;;  %vm1359_vm3 = vcmask 15360  }
  0x12   :  { %133 = vmatpush1.bf16.msra.mxu1 %v72_v10  ;;  %865 = vmatprep.subr.bf16.mxu0 %v1602_v8  ;;  %v1617_v20 = vld [vmem:[#allocation3 + $0x1fc] ss:$12 sps:$4 sm:$0xff]   ;;  %v1612_v21 = vld [vmem:[#allocation3 + $0x78] ss:$12 sps:$4 sm:$0xff]   ;;  %v1618_v25 = vld [vmem:[#allocation3 + $0x60] ss:$12 sps:$4 sm:$0xff]  }
  0x13   :  { %906 = vmatprep.subr.bf16.mxu1 %v1605_v13  ;;  %v1615_v22 = vld [vmem:[#allocation3 + $0x1f8] ss:$12 sps:$4 sm:$0xff]   ;;  %v1621_v26 = vld [vmem:[#allocation3 + $0x1e0] ss:$12 sps:$4 sm:$0xff]   ;;  %v1624_v29 = vld [vmem:[#allocation3 + $0x48] ss:$12 sps:$4 sm:$0xff]  }
  0x14   :  { %1371 = vmatmul.mubr.msk.bf16.vlgmr.msra.gmra.mxu0 %vm60_vm1, %v47_v11  ;;  %v1620_v23 = vld [vmem:[#allocation3 + $0x64] ss:$12 sps:$4 sm:$0xff]   ;;  %v1626_v27 = vld [vmem:[#allocation3 + $0x4c] ss:$12 sps:$4 sm:$0xff]   ;;  %v1627_v30 = vld [vmem:[#allocation3 + $0x1c8] ss:$12 sps:$4 sm:$0xff]  }
  0x15   :  { %1373 = vmatmul.mubr.msk.bf16.vlgmr.msra.gmra.mxu1 %vm60_vm1, %v47_v11  ;;  %866 = vmatpush1.bf16.msra.mxu0 %v1600_v12  ;;  %v1623_v24 = vld [vmem:[#allocation3 + $0x1e4] ss:$12 sps:$4 sm:$0xff]   ;;  %v1629_v28 = vld [vmem:[#allocation3 + $0x1cc] ss:$12 sps:$4 sm:$0xff]   ;;  %v1632_v31 = vld [vmem:[#allocation3 + $0x34] ss:$12 sps:$4 sm:$0xff]  }
  0x16   :  { %907 = vmatpush1.bf16.msra.mxu1 %v1603_v14  ;;  %867 = vmatprep.subr.bf16.mxu0 %v1608_v15  ;;  %v1635_v32 = vld [vmem:[#allocation3 + $0x1b4] ss:$12 sps:$4 sm:$0xff]   ;;  %v1630_v33 = vld [vmem:[#allocation3 + $0x30] ss:$12 sps:$4 sm:$0xff]   ;;  %v1636_v37 = vld [vmem:[#allocation3 + $0x18] ss:$12 sps:$4 sm:$0xff]   ;;  %v165_v14 = vlaneseq }
  0x17   :  { %908 = vmatprep.subr.bf16.mxu1 %v1611_v16  ;;  %v1633_v34 = vld [vmem:[#allocation3 + $0x1b0] ss:$12 sps:$4 sm:$0xff]   ;;  %v1639_v38 = vld [vmem:[#allocation3 + $0x198] ss:$12 sps:$4 sm:$0xff]   ;;  %v1642_v41 = vld [vmem:[#allocation3] ss:$12 sps:$4 sm:$0xff]  }
  0x18   :  { %v1638_v35 = vld [vmem:[#allocation3 + $0x1c] ss:$12 sps:$4 sm:$0xff]   ;;  %v1644_v39 = vld [vmem:[#allocation3 + $0x4] ss:$12 sps:$4 sm:$0xff]   ;;  %v1645_v42 = vld [vmem:[#allocation3 + $0x180] ss:$12 sps:$4 sm:$0xff]  }
  0x19   :  { %868 = vmatpush1.bf16.msra.mxu0 %v1606_v17  ;;  %v1641_v36 = vld [vmem:[#allocation3 + $0x19c] ss:$12 sps:$4 sm:$0xff]   ;;  %v1647_v40 = vld [vmem:[#allocation3 + $0x184] ss:$12 sps:$4 sm:$0xff]   ;;  %v1650_v43 = vld [vmem:[#allocation3 + $0x16c] ss:$12 sps:$4 sm:$0xff]  }
  0x1a   :  { %909 = vmatpush1.bf16.msra.mxu1 %v1609_v18  ;;  %869 = vmatprep.subr.bf16.mxu0 %v1614_v19  ;;  %v1653_v44 = vld [vmem:[#allocation3 + $0x2ec] ss:$12 sps:$4 sm:$0xff]   ;;  %v1648_v45 = vld [vmem:[#allocation3 + $0x168] ss:$12 sps:$4 sm:$0xff]   ;;  %v1654_v49 = vld [vmem:[#allocation3 + $0x150] ss:$12 sps:$4 sm:$0xff]  }
  0x1b   :  { %910 = vmatprep.subr.bf16.mxu1 %v1617_v20  ;;  %v1651_v46 = vld [vmem:[#allocation3 + $0x2e8] ss:$12 sps:$4 sm:$0xff]   ;;  %v1657_v50 = vld [vmem:[#allocation3 + $0x2d0] ss:$12 sps:$4 sm:$0xff]   ;;  %v1660_v53 = vld [vmem:[#allocation3 + $0x138] ss:$12 sps:$4 sm:$0xff]  }
  0x1c   :  { %v1656_v47 = vld [vmem:[#allocation3 + $0x154] ss:$12 sps:$4 sm:$0xff]   ;;  %v1662_v51 = vld [vmem:[#allocation3 + $0x13c] ss:$12 sps:$4 sm:$0xff]   ;;  %v1663_v54 = vld [vmem:[#allocation3 + $0x2b8] ss:$12 sps:$4 sm:$0xff]  }
  0x1d   :  { %870 = vmatpush1.bf16.msra.mxu0 %v1612_v21  ;;  %v1659_v48 = vld [vmem:[#allocation3 + $0x2d4] ss:$12 sps:$4 sm:$0xff]   ;;  %v1665_v52 = vld [vmem:[#allocation3 + $0x2bc] ss:$12 sps:$4 sm:$0xff]   ;;  %v1668_v55 = vld [vmem:[#allocation3 + $0x124] ss:$12 sps:$4 sm:$0xff]  }
  0x1e   :  { %911 = vmatpush1.bf16.msra.mxu1 %v1615_v22  ;;  %871 = vmatprep.subr.bf16.mxu0 %v1620_v23  ;;  %v1671_v56 = vld [vmem:[#allocation3 + $0x2a4] ss:$12 sps:$4 sm:$0xff]   ;;  %v1666_v57 = vld [vmem:[#allocation3 + $0x120] ss:$12 sps:$4 sm:$0xff]   ;;  %v1672_v61 = vld [vmem:[#allocation3 + $0x108] ss:$12 sps:$4 sm:$0xff]  }
  0x1f   :  { %912 = vmatprep.subr.bf16.mxu1 %v1623_v24  ;;  %v1669_v58 = vld [vmem:[#allocation3 + $0x2a0] ss:$12 sps:$4 sm:$0xff]   ;;  %v1675_v62 = vld [vmem:[#allocation3 + $0x288] ss:$12 sps:$4 sm:$0xff]   ;;  %v1678_v2 = vld [vmem:[#allocation3 + $0xf0] ss:$12 sps:$4 sm:$0xff]  }
  0x20   :  { %v1674_v59 = vld [vmem:[#allocation3 + $0x10c] ss:$12 sps:$4 sm:$0xff]   ;;  %v1680_v63 = vld [vmem:[#allocation3 + $0xf4] ss:$12 sps:$4 sm:$0xff]   ;;  %v1681_v3 = vld [vmem:[#allocation3 + $0x270] ss:$12 sps:$4 sm:$0xff]  }
  0x21   :  { %872 = vmatpush1.bf16.msra.mxu0 %v1618_v25  ;;  %v1677_v60 = vld [vmem:[#allocation3 + $0x28c] ss:$12 sps:$4 sm:$0xff]   ;;  %v1683_v1 = vld [vmem:[#allocation3 + $0x274] ss:$12 sps:$4 sm:$0xff]   ;;  %v1686_v4 = vld [vmem:[#allocation3 + $0xdc] ss:$12 sps:$4 sm:$0xff]  }
  0x22   :  { %913 = vmatpush1.bf16.msra.mxu1 %v1621_v26  ;;  %873 = vmatprep.subr.bf16.mxu0 %v1626_v27  ;;  %v1689_v5 = vld [vmem:[#allocation3 + $0x25c] ss:$12 sps:$4 sm:$0xff]   ;;  %v1684_v6 = vld [vmem:[#allocation3 + $0xd8] ss:$12 sps:$4 sm:$0xff]   ;;  %v1690_v10 = vld [vmem:[#allocation3 + $0xc0] ss:$12 sps:$4 sm:$0xff]  }
  0x23   :  { %914 = vmatprep.subr.bf16.mxu1 %v1629_v28  ;;  %v1687_v7 = vld [vmem:[#allocation3 + $0x258] ss:$12 sps:$4 sm:$0xff]   ;;  %v1693_v11 = vld [vmem:[#allocation3 + $0x240] ss:$12 sps:$4 sm:$0xff]   ;;  %v1696_v12 = vld [vmem:[#allocation3 + $0x170] ss:$12 sps:$4 sm:$0xff]  }
  0x24   :  { %v1692_v8 = vld [vmem:[#allocation3 + $0xc4] ss:$12 sps:$4 sm:$0xff]   ;;  %v1841_v15 = vshrl.u32 %v165_v14, 7  ;;  %v163_v18 = vld [vmem:[%s1971_s3] sm:$0xf] }
  0x25   :  { %874 = vmatpush1.bf16.msra.mxu0 %v1624_v29  ;;  %v1695_v9 = vld [vmem:[#allocation3 + $0x244] ss:$12 sps:$4 sm:$0xff]  }
  0x26   :  { %915 = vmatpush1.bf16.msra.mxu1 %v1627_v30  ;;  %875 = vmatprep.subr.bf16.mxu0 %v1632_v31  ;;  %v1697_v13 = vld [vmem:[#allocation3 + $0x2f0] ss:$12 sps:$4 sm:$0xff]   ;;  %v1844_v16 = vsub.s32 0, %v1841_v15  ;;  %v175_v17 = vsub.s32 2, %v1841_v15  ;;  %v171_v19 = vsub.s32 1, %v1841_v15  ;;  %v179_v20 = vsub.s32 3, %v1841_v15 }
  0x27   :  { %916 = vmatprep.subr.bf16.mxu1 %v1635_v32  ;;  %v1718_v14 = vld [vmem:[#allocation3 + $0x38] ss:$12 sps:$4 sm:$0xff]  }
  0x28   :  { %v168_v21 = vrot.slane %v163_v18, %v1844_v16  ;;  %v176_v22 = vrot.slane %v163_v18, %v175_v17  ;;  %v172_v23 = vrot.slane %v163_v18, %v171_v19  ;;  %v180_v24 = vrot.slane %v163_v18, %v179_v20  ;;  %v1719_v18 = vld [vmem:[#allocation3 + $0x1b8] ss:$12 sps:$4 sm:$0xff]   ;;  %v1720_v20 = vld [vmem:[#allocation3 + $0xe0] ss:$12 sps:$4 sm:$0xff]  }
  0x29   :  { %876 = vmatpush1.bf16.msra.mxu0 %v1630_v33 }
  0x2a   :  { %917 = vmatpush1.bf16.msra.mxu1 %v1633_v34  ;;  %877 = vmatprep.subr.bf16.mxu0 %v1638_v35  ;;  %v185_v25 = vpack.c.bf16 %v168_v21, %v168_v21  ;;  %v187_v26 = vpack.c.bf16 %v176_v22, %v176_v22  ;;  %v186_v27 = vpack.c.bf16 %v172_v23, %v172_v23  ;;  %v1721_v21 = vld [vmem:[#allocation3 + $0x260] ss:$12 sps:$4 sm:$0xff]  }
  0x2b   :  { %918 = vmatprep.subr.bf16.mxu1 %v1641_v36  ;;  %v188_v28 = vpack.c.bf16 %v180_v24, %v180_v24  ;;  %v1722_v22 = vld [vmem:[#allocation3 + $0x20] ss:$12 sps:$4 sm:$0xff]   ;;  %v1724_v24 = vld [vmem:[#allocation3 + $0xc8] ss:$12 sps:$4 sm:$0xff]  }
  0x2c   :  { %v190_v29 = vpack.i.b16 %v185_v25, %v185_v25  ;;  %v204_v30 = vpack.i.b16 %v187_v26, %v187_v26  ;;  %v197_v31 = vpack.i.b16 %v186_v27, %v186_v27  ;;  %v1723_v23 = vld [vmem:[#allocation3 + $0x1a0] ss:$12 sps:$4 sm:$0xff]   ;;  %v1725_v25 = vld [vmem:[#allocation3 + $0x248] ss:$12 sps:$4 sm:$0xff]  }
  0x2d   :  { %878 = vmatpush1.bf16.msra.mxu0 %v1636_v37  ;;  %v211_v32 = vpack.i.b16 %v188_v28, %v188_v28  ;;  %v1726_v26 = vld [vmem:[#allocation3 + $0x8] ss:$12 sps:$4 sm:$0xff]   ;;  %v1728_v28 = vld [vmem:[%s1974_s6 + $0x78] sm:$0xff]  }
  0x2e   :  { %919 = vmatpush1.bf16.msra.mxu1 %v1639_v38  ;;  %879 = vmatprep.subr.bf16.mxu0 %v1644_v39  ;;  %v195_v34 = vrot.slane %v190_v29, %v1844_v16  ;;  %v209_v36 = vrot.slane %v204_v30, %v1844_v16  ;;  %v202_v39 = vrot.slane %v197_v31, %v1844_v16  ;;  %v1727_v27 = vld [vmem:[#allocation3 + $0x188] ss:$12 sps:$4 sm:$0xff]   ;;  %v1729_v29 = vld [vmem:[%s1974_s6 + $0x38] sm:$0xff]  }
  0x2f   :  { %920 = vmatprep.subr.bf16.mxu1 %v1647_v40  ;;  %v216_v40 = vrot.slane %v211_v32, %v1844_v16  ;;  %v1730_v30 = vld [vmem:[%s1974_s6 + $0x70] sm:$0xff]   ;;  %v1732_v32 = vld [vmem:[%s1974_s6 + $0x68] sm:$0xff]  }
  0x30   :  { %v1731_v31 = vld [vmem:[%s1974_s6 + $0x30] sm:$0xff]  }
  0x31   :  { %880 = vmatpush1.bf16.msra.mxu0 %v1642_v41 }
  0x32   :  { %921 = vmatpush1.bf16.msra.mxu1 %v1645_v42  ;;  %881 = vmatprep.subr.bf16.mxu0 %v1650_v43 }
  0x33   :  { %922 = vmatprep.subr.bf16.mxu1 %v1653_v44 }
  0x35   :  { %882 = vmatpush2.bf16.msra.mxu0 %v1648_v45 }
  0x36   :  { %923 = vmatpush2.bf16.msra.mxu1 %v1651_v46  ;;  %883 = vmatprep.subr.bf16.mxu0 %v1656_v47 }
  0x37   :  { %924 = vmatprep.subr.bf16.mxu1 %v1659_v48 }
  0x39   :  { %884 = vmatpush2.bf16.msra.mxu0 %v1654_v49 }
  0x3a   :  { %925 = vmatpush2.bf16.msra.mxu1 %v1657_v50  ;;  %885 = vmatprep.subr.bf16.mxu0 %v1662_v51 }
  0x3b   :  { %926 = vmatprep.subr.bf16.mxu1 %v1665_v52 }
  0x3d   :  { %886 = vmatpush2.bf16.msra.mxu0 %v1660_v53 }
  0x3e   :  { %927 = vmatpush2.bf16.msra.mxu1 %v1663_v54  ;;  %887 = vmatprep.subr.bf16.mxu0 %v1668_v55  ;;  %v1698_v55 = vld [vmem:[#allocation3 + $0xb0] ss:$12 sps:$4 sm:$0xff]  }
  0x3f   :  { %928 = vmatprep.subr.bf16.mxu1 %v1671_v56  ;;  %v1699_v56 = vld [vmem:[#allocation3 + $0x230] ss:$12 sps:$4 sm:$0xff]  }
  0x41   :  { %888 = vmatpush2.bf16.msra.mxu0 %v1666_v57 }
  0x42   :  { %929 = vmatpush2.bf16.msra.mxu1 %v1669_v58  ;;  %889 = vmatprep.subr.bf16.mxu0 %v1674_v59  ;;  %v1700_v59 = vld [vmem:[#allocation3 + $0x158] ss:$12 sps:$4 sm:$0xff]  }
  0x43   :  { %930 = vmatprep.subr.bf16.mxu1 %v1677_v60  ;;  %v1701_v60 = vld [vmem:[#allocation3 + $0x2d8] ss:$12 sps:$4 sm:$0xff]  }
  0x45   :  { %890 = vmatpush2.bf16.msra.mxu0 %v1672_v61  ;;  %v1702_v61 = vld [vmem:[#allocation3 + $0x98] ss:$12 sps:$4 sm:$0xff]  }
  0x46   :  { %931 = vmatpush2.bf16.msra.mxu1 %v1675_v62  ;;  %891 = vmatprep.subr.bf16.mxu0 %v1680_v63  ;;  %v1703_v62 = vld [vmem:[#allocation3 + $0x218] ss:$12 sps:$4 sm:$0xff]   ;;  %v1704_v63 = vld [vmem:[#allocation3 + $0x140] ss:$12 sps:$4 sm:$0xff]  }
  0x47   :  { %932 = vmatprep.subr.bf16.mxu1 %v1683_v1  ;;  %v1705_v1 = vld [vmem:[#allocation3 + $0x2c0] ss:$12 sps:$4 sm:$0xff]  }
  0x49   :  { %892 = vmatpush2.bf16.msra.mxu0 %v1678_v2  ;;  %v1706_v2 = vld [vmem:[#allocation3 + $0x80] ss:$12 sps:$4 sm:$0xff]  }
  0x4a   :  { %933 = vmatpush2.bf16.msra.mxu1 %v1681_v3  ;;  %893 = vmatprep.subr.bf16.mxu0 %v1686_v4  ;;  %v1707_v3 = vld [vmem:[#allocation3 + $0x200] ss:$12 sps:$4 sm:$0xff]   ;;  %v1708_v4 = vld [vmem:[#allocation3 + $0x128] ss:$12 sps:$4 sm:$0xff]  }
  0x4b   :  { %934 = vmatprep.subr.bf16.mxu1 %v1689_v5  ;;  %v1709_v5 = vld [vmem:[#allocation3 + $0x2a8] ss:$12 sps:$4 sm:$0xff]  }
  0x4d   :  { %894 = vmatpush2.bf16.msra.mxu0 %v1684_v6  ;;  %v1710_v6 = vld [vmem:[#allocation3 + $0x68] ss:$12 sps:$4 sm:$0xff]  }
  0x4e   :  { %935 = vmatpush2.bf16.msra.mxu1 %v1687_v7  ;;  %895 = vmatprep.subr.bf16.mxu0 %v1692_v8  ;;  %v1711_v7 = vld [vmem:[#allocation3 + $0x1e8] ss:$12 sps:$4 sm:$0xff]   ;;  %v1712_v8 = vld [vmem:[#allocation3 + $0x110] ss:$12 sps:$4 sm:$0xff]  }
  0x4f   :  { %936 = vmatprep.subr.bf16.mxu1 %v1695_v9  ;;  %v1713_v9 = vld [vmem:[#allocation3 + $0x290] ss:$12 sps:$4 sm:$0xff]  }
  0x51   :  { %896 = vmatpush2.bf16.msra.mxu0 %v1690_v10  ;;  %v1714_v10 = vld [vmem:[#allocation3 + $0x50] ss:$12 sps:$4 sm:$0xff]  }
  0x52   :  { %937 = vmatpush2.bf16.msra.mxu1 %v1693_v11  ;;  %1495 = vmatprep.subr.bf16.mxu0 %v1696_v12  ;;  %v1715_v11 = vld [vmem:[#allocation3 + $0x1d0] ss:$12 sps:$4 sm:$0xff]   ;;  %v1716_v12 = vld [vmem:[#allocation3 + $0xf8] ss:$12 sps:$4 sm:$0xff]  }
  0x53   :  { %1517 = vmatprep.subr.bf16.mxu1 %v1697_v13  ;;  %v1717_v13 = vld [vmem:[#allocation3 + $0x278] ss:$12 sps:$4 sm:$0xff]  }
  0xd4   :  { %v111_v33 = vpop.f32.mrf.mxu0 }
  0xd5   :  { %v152_v35 = vpop.f32.mrf.mxu1  ;;  %v159_v37 = vpack.c.bf16 %v111_v33, %v111_v33  ;;  %v1733_v33 = vld [vmem:[%s1974_s6 + $0x28] sm:$0xff]  }
  0xd6   :  { %v161_v38 = vpack.c.bf16 %v152_v35, %v152_v35  ;;  %v113_v41 = vpop.f32.mrf.mxu0  ;;  %v1735_v35 = vld [vmem:[%s1974_s6 + $0x20] sm:$0xff]  }
  0xd7   :  { %v154_v42 = vpop.f32.mrf.mxu1  ;;  %v160_v43 = vpack.c.bf16 %v113_v41, %v113_v41  ;;  %v217_v45 = vadd.bf16 %v195_v34, %v159_v37  ;;  %v1734_v34 = vld [vmem:[%s1974_s6 + $0x60] sm:$0xff]   ;;  %v1737_v37 = vld [vmem:[%s1974_s6 + $0x18] sm:$0xff]   ;;  %v1741_v41 = vld [vmem:[%s1974_s6 + $0x8] sm:$0xff]  }
  0xd8   :  { %v162_v44 = vpack.c.bf16 %v154_v42, %v154_v42  ;;  %v219_v46 = vadd.bf16 %v209_v36, %v161_v38  ;;  %v115_v47 = vpop.f32.mrf.mxu0  ;;  %v1736_v36 = vld [vmem:[%s1974_s6 + $0x58] sm:$0xff]   ;;  %v1738_v38 = vld [vmem:[%s1974_s6 + $0x50] sm:$0xff]   ;;  %v1742_v42 = vld [vmem:[%s1974_s6 + $0x40] sm:$0xff]  }
  0xd9   :  { %v156_v48 = vpop.f32.mrf.mxu1  ;;  %v218_v49 = vadd.bf16 %v202_v39, %v160_v43  ;;  %v1864_v57 = vmax.bf16 %v1779_v0, %v217_v45  ;;  %v1739_v39 = vld [vmem:[%s1974_s6 + $0x10] sm:$0xff]   ;;  %v1743_v43 = vld [vmem:[%s1974_s6] sm:$0xff]   ;;  %v1780_v45 = vmov 0.0   ;;  %v1746_v47 = vld [vmem:[%s1974_s6 + $0xa8] sm:$0xff]  }
  0xda   :  { %v220_v50 = vadd.bf16 %v216_v40, %v162_v44  ;;  %v116_v51 = vpop.f32.mrf.mxu0  ;;  %v1867_v58 = vmax.bf16 %v1779_v0, %v219_v46  ;;  %v1740_v40 = vld [vmem:[%s1974_s6 + $0x48] sm:$0xff]   ;;  %v1744_v44 = vld [vmem:[%s1974_s6 + $0xb8] sm:$0xff]   ;;  %v1745_v46 = vld [vmem:[%s1974_s6 + $0xb0] sm:$0xff]  }
  0xdb   :  { %v157_v52 = vpop.f32.mrf.mxu1  ;;  %v222_v53 = vmax.bf16 %v1779_v0, %v218_v49  ;;  %v1747_v48 = vld [vmem:[%s1974_s6 + $0xa0] sm:$0xff]   ;;  %v1748_v49 = vld [vmem:[%s1974_s6 + $0x98] sm:$0xff]   ;;  %v1750_v51 = vld [vmem:[%s1974_s6 + $0x88] sm:$0xff]  }
  0xdc   :  { %v224_v54 = vmax.bf16 %v1779_v0, %v220_v50  ;;  %v1749_v50 = vld [vmem:[%s1974_s6 + $0x90] sm:$0xff]   ;;  %v1751_v52 = vld [vmem:[%s1974_s6 + $0x80] sm:$0xff]  }
  0xdd   :  { %897 = vmatprep.mubr.bf16.mxu0 %v222_v53 }
  0xde   :  { %938 = vmatprep.mubr.bf16.mxu1 %v224_v54  ;;  %898 = vmatmul.mubr.bf16.vlgmr.msra.gmra.mxu0 %v1864_v57 }
  0xdf   :  { %939 = vmatmul.mubr.bf16.vlgmr.msra.gmra.mxu1 %v1867_v58  ;;  %1496 = vmatpush3.bf16.msra.mxu0 %v1698_v55 }
  0xe0   :  { %1518 = vmatpush3.bf16.msra.mxu1 %v1699_v56  ;;  %979 = vmatprep.mubr.bf16.mxu0 %v222_v53  ;;  %v1030_v53 = vld [vmem:[%s1973_s5] sm:$0x7] }
  0xe1   :  { %1019 = vmatprep.mubr.bf16.mxu1 %v224_v54  ;;  %1497 = vmatprep.subr.bf16.mxu0 %v1700_v59  ;;  %v1035_v54 = vrot.slane %v1030_v53, %v1844_v16  ;;  %v1039_v55 = vrot.slane %v1030_v53, %v171_v19 }
  0xe2   :  { %1519 = vmatprep.subr.bf16.mxu1 %v1701_v60 }
  0xe3   :  { %1498 = vmatpush3.bf16.msra.mxu0 %v1702_v61  ;;  %v1047_v56 = vpack.c.bf16 %v1035_v54, %v1035_v54 }
  0xe4   :  { %1520 = vmatpush3.bf16.msra.mxu1 %v1703_v62  ;;  %1499 = vmatprep.subr.bf16.mxu0 %v1704_v63 }
  0xe5   :  { %1521 = vmatprep.subr.bf16.mxu1 %v1705_v1 }
  0xe7   :  { %1500 = vmatpush3.bf16.msra.mxu0 %v1706_v2 }
  0xe8   :  { %1522 = vmatpush3.bf16.msra.mxu1 %v1707_v3  ;;  %1501 = vmatprep.subr.bf16.mxu0 %v1708_v4 }
  0xe9   :  { %1523 = vmatprep.subr.bf16.mxu1 %v1709_v5 }
  0xeb   :  { %1502 = vmatpush3.bf16.msra.mxu0 %v1710_v6 }
  0xec   :  { %1524 = vmatpush3.bf16.msra.mxu1 %v1711_v7  ;;  %1503 = vmatprep.subr.bf16.mxu0 %v1712_v8 }
  0xed   :  { %1525 = vmatprep.subr.bf16.mxu1 %v1713_v9 }
  0xef   :  { %1504 = vmatpush3.bf16.msra.mxu0 %v1714_v10 }
  0xf0   :  { %1526 = vmatpush3.bf16.msra.mxu1 %v1715_v11  ;;  %1505 = vmatprep.subr.bf16.mxu0 %v1716_v12 }
  0xf1   :  { %1527 = vmatprep.subr.bf16.mxu1 %v1717_v13 }
  0xf3   :  { %1506 = vmatpush3.bf16.msra.mxu0 %v1718_v14  ;;  %v1043_v14 = vrot.slane %v1030_v53, %v175_v17 }
  0xf4   :  { %1528 = vmatpush3.bf16.msra.mxu1 %v1719_v18  ;;  %1507 = vmatprep.subr.bf16.mxu0 %v1720_v20 }
  0xf5   :  { %1529 = vmatprep.subr.bf16.mxu1 %v1721_v21  ;;  %v1049_v18 = vpack.c.bf16 %v1043_v14, %v1043_v14 }
  0xf7   :  { %1508 = vmatpush3.bf16.msra.mxu0 %v1722_v22  ;;  %v1065_v22 = vpack.i.b16 %v1049_v18, %v1049_v18 }
  0xf8   :  { %1530 = vmatpush3.bf16.msra.mxu1 %v1723_v23  ;;  %1509 = vmatprep.subr.bf16.mxu0 %v1724_v24 }
  0xf9   :  { %1531 = vmatprep.subr.bf16.mxu1 %v1725_v25 }
  0xfb   :  { %1510 = vmatpush3.bf16.msra.mxu0 %v1726_v26 }
  0xfc   :  { %1532 = vmatpush3.bf16.msra.mxu1 %v1727_v27  ;;  %1539 = vmatprep.subr.bf16.mxu0 %v1728_v28 }
  0xfd   :  { %1570 = vmatprep.subr.bf16.mxu1 %v1780_v45 }
  0xfe   :  { %980 = vmatmul.mubr.bf16.vlgmr.msra.gmra.mxu0 %v1864_v57  ;;  %v1048_v57 = vpack.c.bf16 %v1039_v55, %v1039_v55 }
  0xff   :  { %1020 = vmatmul.mubr.bf16.vlgmr.msra.gmra.mxu1 %v1867_v58  ;;  %1540 = vmatpush3.bf16.msra.mxu0 %v1729_v29  ;;  %v1051_v58 = vpack.i.b16 %v1047_v56, %v1047_v56 }
 0x100   :  { %1541 = vmatprep.subr.bf16.mxu0 %v1730_v30  ;;  %1571 = vmatpush3.bf16.msra.mxu1 %v1744_v44  ;;  %v1058_v59 = vpack.i.b16 %v1048_v57, %v1048_v57  ;;  %v1070_v30 = vrot.slane %v1065_v22, %v1844_v16 }
 0x101   :  { %1572 = vmatprep.subr.bf16.mxu1 %v1780_v45  ;;  %1586 = vmatprep.mubr.msk.bf16.mxu1 %vm1781_vm2, %v1780_v45  ;;  %v1056_v63 = vrot.slane %v1051_v58, %v1844_v16 }
 0x102   :  { %v1063_v5 = vrot.slane %v1058_v59, %v1844_v16 }
 0x103   :  { %1542 = vmatpush3.bf16.msra.mxu0 %v1731_v31 }
 0x104   :  { %1543 = vmatprep.subr.bf16.mxu0 %v1732_v32  ;;  %1573 = vmatpush3.bf16.msra.mxu1 %v1745_v46 }
 0x105   :  { %1574 = vmatprep.subr.bf16.mxu1 %v1780_v45 }
 0x107   :  { %1544 = vmatpush3.bf16.msra.mxu0 %v1733_v33 }
 0x108   :  { %1545 = vmatprep.subr.bf16.mxu0 %v1734_v34  ;;  %1575 = vmatpush3.bf16.msra.mxu1 %v1746_v47 }
 0x109   :  { %1576 = vmatprep.subr.bf16.mxu1 %v1780_v45 }
 0x10b   :  { %1546 = vmatpush3.bf16.msra.mxu0 %v1735_v35 }
 0x10c   :  { %1547 = vmatprep.subr.bf16.mxu0 %v1736_v36  ;;  %1577 = vmatpush3.bf16.msra.mxu1 %v1747_v48 }
 0x10d   :  { %1578 = vmatprep.subr.bf16.mxu1 %v1780_v45 }
 0x10f   :  { %1548 = vmatpush3.bf16.msra.mxu0 %v1737_v37 }
 0x110   :  { %1549 = vmatprep.subr.bf16.mxu0 %v1738_v38  ;;  %1579 = vmatpush3.bf16.msra.mxu1 %v1748_v49 }
 0x111   :  { %1580 = vmatprep.subr.bf16.mxu1 %v1780_v45 }
 0x113   :  { %1550 = vmatpush3.bf16.msra.mxu0 %v1739_v39  ;;  %v1470_v39 = vld [vmem:[%s1975_s7] ss:$0 sm:$0xff] }
 0x114   :  { %1551 = vmatprep.subr.bf16.mxu0 %v1740_v40  ;;  %1581 = vmatpush3.bf16.msra.mxu1 %v1749_v50 }
 0x115   :  { %1582 = vmatprep.subr.bf16.mxu1 %v1780_v45 }
 0x117   :  { %1552 = vmatpush3.bf16.msra.mxu0 %v1741_v41 }
 0x118   :  { %1553 = vmatprep.subr.bf16.mxu0 %v1742_v42  ;;  %1583 = vmatpush3.bf16.msra.mxu1 %v1750_v51 }
 0x119   :  { %1584 = vmatprep.subr.bf16.mxu1 %v1780_v45 }
 0x11b   :  { %1554 = vmatpush3.bf16.msra.mxu0 %v1743_v43 }
 0x11c   :  { %1585 = vmatpush3.bf16.msra.mxu1 %v1751_v52 }
 0x19e   :  { %v899_v60 = vpop.f32.mrf.mxu0 }
 0x19f   :  { %v940_v61 = vpop.f32.mrf.mxu1 }
 0x1a0   :  { %v941_v62 = vadd.f32 %v940_v61, %v899_v60  ;;  %v901_v1 = vpop.f32.mrf.mxu0 }
 0x1a1   :  { %v942_v2 = vpop.f32.mrf.mxu1 }
 0x1a2   :  { %v1027_v3 = vpack.c.bf16 %v941_v62, %v941_v62  ;;  %v943_v4 = vadd.f32 %v942_v2, %v901_v1  ;;  %v903_v6 = vpop.f32.mrf.mxu0 }
 0x1a3   :  { %v944_v7 = vpop.f32.mrf.mxu1 }
 0x1a4   :  { %v1028_v8 = vpack.c.bf16 %v943_v4, %v943_v4  ;;  %v1071_v9 = vadd.bf16 %v1056_v63, %v1027_v3  ;;  %v904_v19 = vpop.f32.mrf.mxu0 }
 0x1a5   :  { %v945_v10 = vpop.f32.mrf.mxu1 }
 0x1a6   :  { %v1072_v11 = vadd.bf16 %v1063_v5, %v1028_v8  ;;  %v1074_v13 = vmax.bf16 %v1779_v0, %v1071_v9 }
 0x1a8   :  { %v1075_v12 = vmax.bf16 %v1779_v0, %v1072_v11 }
 0x1aa   :  { %1308 = vmatprep.mubr.bf16.mxu0 %v1075_v12 }
 0x1ab   :  { %1309 = vmatmul.mubr.bf16.vlgmr.msra.gmra.mxu0 %v1074_v13 }
 0x1be   :  { %v1511_v20 = vpop.f32.mrf.mxu0 }
 0x1bf   :  { %v1533_v21 = vpop.f32.mrf.mxu1 }
 0x1c0   :  { %v1512_v23 = vpop.f32.mrf.mxu0 }
 0x1c1   :  { %v1534_v24 = vpop.f32.mrf.mxu1  ;;  %v1513_v25 = vadd.f32 %v1512_v23, %v1511_v20 }
 0x1c2   :  { %v1535_v26 = vadd.f32 %v1534_v24, %v1533_v21  ;;  %v1514_v27 = vpop.f32.mrf.mxu0 }
 0x1c3   :  { %v1536_v28 = vpop.f32.mrf.mxu1 }
 0x1c4   :  { %v1022_v29 = vadd.f32 %v1535_v26, %v1513_v25  ;;  %v1515_v31 = vpop.f32.mrf.mxu0 }
 0x1c5   :  { %v1537_v32 = vpop.f32.mrf.mxu1 }
 0x1c6   :  { %v1029_v33 = vpack.c.bf16 %v1022_v29, %v1022_v29 }
 0x1c8   :  { %v1073_v34 = vadd.bf16 %v1070_v30, %v1029_v33 }
 0x1ca   :  { %v1076_v15 = vmax.bf16 %v1779_v0, %v1073_v34  ;;  %v1357_v0 = vstv %s1968_s0 }
 0x1cc   :  { %1587 = vmatmul.mubr.bf16.vlgmr.msra.gmra.mxu1 %v1076_v15 }
 0x26b   :  { %v1555_v17 = vpop.f32.mrf.mxu0 }
 0x26d   :  { %v1556_v35 = vpop.f32.mrf.mxu0 }
 0x26e   :  { %v1557_v38 = vadd.f32 %v1556_v35, %v1555_v17 }
 0x26f   :  { %v1558_v36 = vpop.f32.mrf.mxu0 }
 0x270   :  { %v1311_v40 = vadd.f32 %v1557_v38, %v1470_v39 }
 0x271   :  { %v1559_v37 = vpop.f32.mrf.mxu0 }
 0x28c   :  { %v1350_v41 = vpop.f32.mrf.mxu1 }
 0x28d   :  { %v1351_v42 = vadd.f32 %v1350_v41, %v1311_v40 }
 0x28e   :  { %v1588_v16 = vpop.f32.mrf.mxu1 }
 0x28f   :  { %1752 = vtanh.f32 %v1351_v42 }
 0x290   :  { %v1353_v43 = vpop.f32.mrf.mxu1 }
 0x292   :  { %v1589_v44 = vpop.f32.mrf.mxu1 }
 0x29c   :  { %v1753_v45 = vpop.eup %1752 }
 0x29d   :  { %v1358_v46 = vmul.f32 %v1753_v45, %v1357_v0 }
 0x29f   :  { %1360 = vst.msk [vmem:[%s1976_s8] sm:$0xff] %vm1359_vm3, %v1358_v46 }
 0x2a0   :  { %1365 = vsyncpa [#allocation4], 1 }

// kernel: tpu_custom_call.1
= control target key start
LH: loop header
LB: loop body
LE: loop exit
PB: predicated region body
PF: predicated region fallthrough
CT: control target
= control target key end

     0   :  { %14 = vsyncpa [#allocation4], 0  ;;  %s1776_s27 = smov [#allocation3]   ;;  %s1968_s0 = inlined_call_operand.<no memory space> [shape: f32[1,1], index: 0, kind: input, shape index: {}]   ;;  %s1969_s1 = inlined_call_operand.vmem [shape: f32[8,8], index: 1, kind: input, shape index: {}]   ;;  %s1970_s2 = inlined_call_operand.vmem [shape: bf16[8,512], index: 2, kind: input, shape index: {}]   ;;  %s1971_s3 = inlined_call_operand.vmem [shape: f32[1,512], index: 3, kind: input, shape index: {}]   ;;  %s1972_s4 = inlined_call_operand.hbm [shape: bf16[512,384], index: 4, kind: input, shape index: {}]   ;;  %s1973_s5 = inlined_call_operand.vmem [shape: f32[1,384], index: 5, kind: input, shape index: {}]   ;;  %s1974_s6 = inlined_call_operand.vmem [shape: bf16[384,2], index: 6, kind: input, shape index: {}]   ;;  %s1975_s7 = inlined_call_operand.vmem [shape: f32[1,2], index: 7, kind: input, shape index: {}]   ;;  %s1976_s8 = inlined_call_operand.vmem [shape: f32[8,2], index: 8, kind: output, shape index: {}]  }
   0x1   :  { %s28_s28 = sshll.u32 %s1776_s27, 4  ;;  %s29_s28 = int_to_ptr.vmem [resolvable:$true] %s28_s28 }
   0x2   :  { %s1762_s29 = scalar_lea.vmem %s29_s28, 12288  ;;  %p1767_p1 = scmp.lt.s32.totalorder %s29_s28, %s29_s28 }
   0x3   :  { %p1763_p0 = scmp.ne.s32.totalorder %s29_s28, %s1762_s29  ;;  %p1768_p2 = scmp.lt.s32.totalorder %s1762_s29, %s1762_s29 }
   0x5   :  { %p1769_p3 = por %p1768_p2, %p1767_p1 }
   0x7   :  { %p1770_p4 = pnand %p1769_p3, %p1763_p0 }
   0x9   :  { %1773 = shalt.err (!%p1770_p4)
}
   0xa   :  { %s1777_s30 = smov 192   ;;  %s1778_s9 = smov 12  }
   0xb   :  { %34 = dma.hbm_to_vmem [thread:$0]  %s1972_s4, 12288, %s29_s28, [#allocation4], %s1777_s30, %s1777_s30, %s1778_s9  }
   0xc   :  { %1774 = dma.done.wait [#allocation4], 12288  }
   0xd   :  { %1775 = vsyncadd [#allocation4], 4294955008  ;;  %v1779_v0 = vmov 0   ;;  %v48_v1 = vld [vmem:[%s1970_s2] sm:$0xff]  ;;  %vm64_vm0 = vcmask 1043456   ;;  %v49_v2 = vld [vmem:[%s1970_s2 + $0x8] sm:$0xff] }
   0xe   :  { %109 = vmatprep.mubr.bf16.mxu0 %v1779_v0  ;;  %150 = vmatprep.mubr.bf16.mxu1 %v1779_v0  ;;  %v46_v3 = vld [vmem:[%s1969_s1] sm:$0xff]  ;;  %v1367_v4 = vcombine.high %v48_v1, %v48_v1  ;;  %v1369_v5 = vcombine.high %v49_v2, %v49_v2  ;;  %v1366_v6 = vcombine.low %v48_v1, %v48_v1  ;;  %v1602_v8 = vld [vmem:[#allocation3 + $0xac] ss:$12 sps:$4 sm:$0xff]   ;;  %v1600_v12 = vld [vmem:[#allocation3 + $0xa8] ss:$12 sps:$4 sm:$0xff]   ;;  %vm60_vm1 = vcmask 64512  }
   0xf   :  { %v1368_v7 = vcombine.low %v49_v2, %v49_v2  ;;  %v47_v11 = vpack.c.bf16 %v46_v3, %v46_v3  ;;  %v1605_v13 = vld [vmem:[#allocation3 + $0x22c] ss:$12 sps:$4 sm:$0xff]   ;;  %v1603_v14 = vld [vmem:[#allocation3 + $0x228] ss:$12 sps:$4 sm:$0xff]   ;;  %v1606_v17 = vld [vmem:[#allocation3 + $0x90] ss:$12 sps:$4 sm:$0xff]  }
  0x10   :  { %1370 = vmatprep.subr.msk.bf16.mxu0 %vm64_vm0, %v1367_v4  ;;  %1372 = vmatprep.subr.msk.bf16.mxu1 %vm64_vm0, %v1369_v5  ;;  %v66_v9 = vsel %vm64_vm0, %v1366_v6, 0  ;;  %v1608_v15 = vld [vmem:[#allocation3 + $0x94] ss:$12 sps:$4 sm:$0xff]   ;;  %v1609_v18 = vld [vmem:[#allocation3 + $0x210] ss:$12 sps:$4 sm:$0xff]   ;;  %vm1781_vm2 = vmmov 0  }
  0x11   :  { %v72_v10 = vsel %vm64_vm0, %v1368_v7, 0  ;;  %92 = vmatpush1.bf16.msra.mxu0 %v66_v9  ;;  %v1611_v16 = vld [vmem:[#allocation3 + $0x214] ss:$12 sps:$4 sm:$0xff]   ;;  %v1614_v19 = vld [vmem:[#allocation3 + $0x7c] ss:$12 sps:$4 sm:$0xff]   ;;  %vm1359_vm3 = vcmask 15360  }
  0x12   :  { %133 = vmatpush1.bf16.msra.mxu1 %v72_v10  ;;  %865 = vmatprep.subr.bf16.mxu0 %v1602_v8  ;;  %v1617_v20 = vld [vmem:[#allocation3 + $0x1fc] ss:$12 sps:$4 sm:$0xff]   ;;  %v1612_v21 = vld [vmem:[#allocation3 + $0x78] ss:$12 sps:$4 sm:$0xff]   ;;  %v1618_v25 = vld [vmem:[#allocation3 + $0x60] ss:$12 sps:$4 sm:$0xff]  }
  0x13   :  { %906 = vmatprep.subr.bf16.mxu1 %v1605_v13  ;;  %v1615_v22 = vld [vmem:[#allocation3 + $0x1f8] ss:$12 sps:$4 sm:$0xff]   ;;  %v1621_v26 = vld [vmem:[#allocation3 + $0x1e0] ss:$12 sps:$4 sm:$0xff]   ;;  %v1624_v29 = vld [vmem:[#allocation3 + $0x48] ss:$12 sps:$4 sm:$0xff]  }
  0x14   :  { %1371 = vmatmul.mubr.msk.bf16.vlgmr.msra.gmra.mxu0 %vm60_vm1, %v47_v11  ;;  %v1620_v23 = vld [vmem:[#allocation3 + $0x64] ss:$12 sps:$4 sm:$0xff]   ;;  %v1626_v27 = vld [vmem:[#allocation3 + $0x4c] ss:$12 sps:$4 sm:$0xff]   ;;  %v1627_v30 = vld [vmem:[#allocation3 + $0x1c8] ss:$12 sps:$4 sm:$0xff]  }
  0x15   :  { %1373 = vmatmul.mubr.msk.bf16.vlgmr.msra.gmra.mxu1 %vm60_vm1, %v47_v11  ;;  %866 = vmatpush1.bf16.msra.mxu0 %v1600_v12  ;;  %v1623_v24 = vld [vmem:[#allocation3 + $0x1e4] ss:$12 sps:$4 sm:$0xff]   ;;  %v1629_v28 = vld [vmem:[#allocation3 + $0x1cc] ss:$12 sps:$4 sm:$0xff]   ;;  %v1632_v31 = vld [vmem:[#allocation3 + $0x34] ss:$12 sps:$4 sm:$0xff]  }
  0x16   :  { %907 = vmatpush1.bf16.msra.mxu1 %v1603_v14  ;;  %867 = vmatprep.subr.bf16.mxu0 %v1608_v15  ;;  %v1635_v32 = vld [vmem:[#allocation3 + $0x1b4] ss:$12 sps:$4 sm:$0xff]   ;;  %v1630_v33 = vld [vmem:[#allocation3 + $0x30] ss:$12 sps:$4 sm:$0xff]   ;;  %v1636_v37 = vld [vmem:[#allocation3 + $0x18] ss:$12 sps:$4 sm:$0xff]   ;;  %v165_v14 = vlaneseq }
  0x17   :  { %908 = vmatprep.subr.bf16.mxu1 %v1611_v16  ;;  %v1633_v34 = vld [vmem:[#allocation3 + $0x1b0] ss:$12 sps:$4 sm:$0xff]   ;;  %v1639_v38 = vld [vmem:[#allocation3 + $0x198] ss:$12 sps:$4 sm:$0xff]   ;;  %v1642_v41 = vld [vmem:[#allocation3] ss:$12 sps:$4 sm:$0xff]  }
  0x18   :  { %v1638_v35 = vld [vmem:[#allocation3 + $0x1c] ss:$12 sps:$4 sm:$0xff]   ;;  %v1644_v39 = vld [vmem:[#allocation3 + $0x4] ss:$12 sps:$4 sm:$0xff]   ;;  %v1645_v42 = vld [vmem:[#allocation3 + $0x180] ss:$12 sps:$4 sm:$0xff]  }
  0x19   :  { %868 = vmatpush1.bf16.msra.mxu0 %v1606_v17  ;;  %v1641_v36 = vld [vmem:[#allocation3 + $0x19c] ss:$12 sps:$4 sm:$0xff]   ;;  %v1647_v40 = vld [vmem:[#allocation3 + $0x184] ss:$12 sps:$4 sm:$0xff]   ;;  %v1650_v43 = vld [vmem:[#allocation3 + $0x16c] ss:$12 sps:$4 sm:$0xff]  }
  0x1a   :  { %909 = vmatpush1.bf16.msra.mxu1 %v1609_v18  ;;  %869 = vmatprep.subr.bf16.mxu0 %v1614_v19  ;;  %v1653_v44 = vld [vmem:[#allocation3 + $0x2ec] ss:$12 sps:$4 sm:$0xff]   ;;  %v1648_v45 = vld [vmem:[#allocation3 + $0x168] ss:$12 sps:$4 sm:$0xff]   ;;  %v1654_v49 = vld [vmem:[#allocation3 + $0x150] ss:$12 sps:$4 sm:$0xff]  }
  0x1b   :  { %910 = vmatprep.subr.bf16.mxu1 %v1617_v20  ;;  %v1651_v46 = vld [vmem:[#allocation3 + $0x2e8] ss:$12 sps:$4 sm:$0xff]   ;;  %v1657_v50 = vld [vmem:[#allocation3 + $0x2d0] ss:$12 sps:$4 sm:$0xff]   ;;  %v1660_v53 = vld [vmem:[#allocation3 + $0x138] ss:$12 sps:$4 sm:$0xff]  }
  0x1c   :  { %v1656_v47 = vld [vmem:[#allocation3 + $0x154] ss:$12 sps:$4 sm:$0xff]   ;;  %v1662_v51 = vld [vmem:[#allocation3 + $0x13c] ss:$12 sps:$4 sm:$0xff]   ;;  %v1663_v54 = vld [vmem:[#allocation3 + $0x2b8] ss:$12 sps:$4 sm:$0xff]  }
  0x1d   :  { %870 = vmatpush1.bf16.msra.mxu0 %v1612_v21  ;;  %v1659_v48 = vld [vmem:[#allocation3 + $0x2d4] ss:$12 sps:$4 sm:$0xff]   ;;  %v1665_v52 = vld [vmem:[#allocation3 + $0x2bc] ss:$12 sps:$4 sm:$0xff]   ;;  %v1668_v55 = vld [vmem:[#allocation3 + $0x124] ss:$12 sps:$4 sm:$0xff]  }
  0x1e   :  { %911 = vmatpush1.bf16.msra.mxu1 %v1615_v22  ;;  %871 = vmatprep.subr.bf16.mxu0 %v1620_v23  ;;  %v1671_v56 = vld [vmem:[#allocation3 + $0x2a4] ss:$12 sps:$4 sm:$0xff]   ;;  %v1666_v57 = vld [vmem:[#allocation3 + $0x120] ss:$12 sps:$4 sm:$0xff]   ;;  %v1672_v61 = vld [vmem:[#allocation3 + $0x108] ss:$12 sps:$4 sm:$0xff]  }
  0x1f   :  { %912 = vmatprep.subr.bf16.mxu1 %v1623_v24  ;;  %v1669_v58 = vld [vmem:[#allocation3 + $0x2a0] ss:$12 sps:$4 sm:$0xff]   ;;  %v1675_v62 = vld [vmem:[#allocation3 + $0x288] ss:$12 sps:$4 sm:$0xff]   ;;  %v1678_v2 = vld [vmem:[#allocation3 + $0xf0] ss:$12 sps:$4 sm:$0xff]  }
  0x20   :  { %v1674_v59 = vld [vmem:[#allocation3 + $0x10c] ss:$12 sps:$4 sm:$0xff]   ;;  %v1680_v63 = vld [vmem:[#allocation3 + $0xf4] ss:$12 sps:$4 sm:$0xff]   ;;  %v1681_v3 = vld [vmem:[#allocation3 + $0x270] ss:$12 sps:$4 sm:$0xff]  }
  0x21   :  { %872 = vmatpush1.bf16.msra.mxu0 %v1618_v25  ;;  %v1677_v60 = vld [vmem:[#allocation3 + $0x28c] ss:$12 sps:$4 sm:$0xff]   ;;  %v1683_v1 = vld [vmem:[#allocation3 + $0x274] ss:$12 sps:$4 sm:$0xff]   ;;  %v1686_v4 = vld [vmem:[#allocation3 + $0xdc] ss:$12 sps:$4 sm:$0xff]  }
  0x22   :  { %913 = vmatpush1.bf16.msra.mxu1 %v1621_v26  ;;  %873 = vmatprep.subr.bf16.mxu0 %v1626_v27  ;;  %v1689_v5 = vld [vmem:[#allocation3 + $0x25c] ss:$12 sps:$4 sm:$0xff]   ;;  %v1684_v6 = vld [vmem:[#allocation3 + $0xd8] ss:$12 sps:$4 sm:$0xff]   ;;  %v1690_v10 = vld [vmem:[#allocation3 + $0xc0] ss:$12 sps:$4 sm:$0xff]  }
  0x23   :  { %914 = vmatprep.subr.bf16.mxu1 %v1629_v28  ;;  %v1687_v7 = vld [vmem:[#allocation3 + $0x258] ss:$12 sps:$4 sm:$0xff]   ;;  %v1693_v11 = vld [vmem:[#allocation3 + $0x240] ss:$12 sps:$4 sm:$0xff]   ;;  %v1696_v12 = vld [vmem:[#allocation3 + $0x170] ss:$12 sps:$4 sm:$0xff]  }
  0x24   :  { %v1692_v8 = vld [vmem:[#allocation3 + $0xc4] ss:$12 sps:$4 sm:$0xff]   ;;  %v1841_v15 = vshrl.u32 %v165_v14, 7  ;;  %v163_v18 = vld [vmem:[%s1971_s3] sm:$0xf] }
  0x25   :  { %874 = vmatpush1.bf16.msra.mxu0 %v1624_v29  ;;  %v1695_v9 = vld [vmem:[#allocation3 + $0x244] ss:$12 sps:$4 sm:$0xff]  }
  0x26   :  { %915 = vmatpush1.bf16.msra.mxu1 %v1627_v30  ;;  %875 = vmatprep.subr.bf16.mxu0 %v1632_v31  ;;  %v1697_v13 = vld [vmem:[#allocation3 + $0x2f0] ss:$12 sps:$4 sm:$0xff]   ;;  %v1844_v16 = vsub.s32 0, %v1841_v15  ;;  %v175_v17 = vsub.s32 2, %v1841_v15  ;;  %v171_v19 = vsub.s32 1, %v1841_v15  ;;  %v179_v20 = vsub.s32 3, %v1841_v15 }
  0x27   :  { %916 = vmatprep.subr.bf16.mxu1 %v1635_v32  ;;  %v1718_v14 = vld [vmem:[#allocation3 + $0x38] ss:$12 sps:$4 sm:$0xff]  }
  0x28   :  { %v168_v21 = vrot.slane %v163_v18, %v1844_v16  ;;  %v176_v22 = vrot.slane %v163_v18, %v175_v17  ;;  %v172_v23 = vrot.slane %v163_v18, %v171_v19  ;;  %v180_v24 = vrot.slane %v163_v18, %v179_v20  ;;  %v1719_v18 = vld [vmem:[#allocation3 + $0x1b8] ss:$12 sps:$4 sm:$0xff]   ;;  %v1720_v20 = vld [vmem:[#allocation3 + $0xe0] ss:$12 sps:$4 sm:$0xff]  }
  0x29   :  { %876 = vmatpush1.bf16.msra.mxu0 %v1630_v33 }
  0x2a   :  { %917 = vmatpush1.bf16.msra.mxu1 %v1633_v34  ;;  %877 = vmatprep.subr.bf16.mxu0 %v1638_v35  ;;  %v185_v25 = vpack.c.bf16 %v168_v21, %v168_v21  ;;  %v187_v26 = vpack.c.bf16 %v176_v22, %v176_v22  ;;  %v186_v27 = vpack.c.bf16 %v172_v23, %v172_v23  ;;  %v1721_v21 = vld [vmem:[#allocation3 + $0x260] ss:$12 sps:$4 sm:$0xff]  }
  0x2b   :  { %918 = vmatprep.subr.bf16.mxu1 %v1641_v36  ;;  %v188_v28 = vpack.c.bf16 %v180_v24, %v180_v24  ;;  %v1722_v22 = vld [vmem:[#allocation3 + $0x20] ss:$12 sps:$4 sm:$0xff]   ;;  %v1724_v24 = vld [vmem:[#allocation3 + $0xc8] ss:$12 sps:$4 sm:$0xff]  }
  0x2c   :  { %v190_v29 = vpack.i.b16 %v185_v25, %v185_v25  ;;  %v204_v30 = vpack.i.b16 %v187_v26, %v187_v26  ;;  %v197_v31 = vpack.i.b16 %v186_v27, %v186_v27  ;;  %v1723_v23 = vld [vmem:[#allocation3 + $0x1a0] ss:$12 sps:$4 sm:$0xff]   ;;  %v1725_v25 = vld [vmem:[#allocation3 + $0x248] ss:$12 sps:$4 sm:$0xff]  }
  0x2d   :  { %878 = vmatpush1.bf16.msra.mxu0 %v1636_v37  ;;  %v211_v32 = vpack.i.b16 %v188_v28, %v188_v28  ;;  %v1726_v26 = vld [vmem:[#allocation3 + $0x8] ss:$12 sps:$4 sm:$0xff]   ;;  %v1728_v28 = vld [vmem:[%s1974_s6 + $0x78] sm:$0xff]  }
  0x2e   :  { %919 = vmatpush1.bf16.msra.mxu1 %v1639_v38  ;;  %879 = vmatprep.subr.bf16.mxu0 %v1644_v39  ;;  %v195_v34 = vrot.slane %v190_v29, %v1844_v16  ;;  %v209_v36 = vrot.slane %v204_v30, %v1844_v16  ;;  %v202_v39 = vrot.slane %v197_v31, %v1844_v16  ;;  %v1727_v27 = vld [vmem:[#allocation3 + $0x188] ss:$12 sps:$4 sm:$0xff]   ;;  %v1729_v29 = vld [vmem:[%s1974_s6 + $0x38] sm:$0xff]  }
  0x2f   :  { %920 = vmatprep.subr.bf16.mxu1 %v1647_v40  ;;  %v216_v40 = vrot.slane %v211_v32, %v1844_v16  ;;  %v1730_v30 = vld [vmem:[%s1974_s6 + $0x70] sm:$0xff]   ;;  %v1732_v32 = vld [vmem:[%s1974_s6 + $0x68] sm:$0xff]  }
  0x30   :  { %v1731_v31 = vld [vmem:[%s1974_s6 + $0x30] sm:$0xff]  }
  0x31   :  { %880 = vmatpush1.bf16.msra.mxu0 %v1642_v41 }
  0x32   :  { %921 = vmatpush1.bf16.msra.mxu1 %v1645_v42  ;;  %881 = vmatprep.subr.bf16.mxu0 %v1650_v43 }
  0x33   :  { %922 = vmatprep.subr.bf16.mxu1 %v1653_v44 }
  0x35   :  { %882 = vmatpush2.bf16.msra.mxu0 %v1648_v45 }
  0x36   :  { %923 = vmatpush2.bf16.msra.mxu1 %v1651_v46  ;;  %883 = vmatprep.subr.bf16.mxu0 %v1656_v47 }
  0x37   :  { %924 = vmatprep.subr.bf16.mxu1 %v1659_v48 }
  0x39   :  { %884 = vmatpush2.bf16.msra.mxu0 %v1654_v49 }
  0x3a   :  { %925 = vmatpush2.bf16.msra.mxu1 %v1657_v50  ;;  %885 = vmatprep.subr.bf16.mxu0 %v1662_v51 }
  0x3b   :  { %926 = vmatprep.subr.bf16.mxu1 %v1665_v52 }
  0x3d   :  { %886 = vmatpush2.bf16.msra.mxu0 %v1660_v53 }
  0x3e   :  { %927 = vmatpush2.bf16.msra.mxu1 %v1663_v54  ;;  %887 = vmatprep.subr.bf16.mxu0 %v1668_v55  ;;  %v1698_v55 = vld [vmem:[#allocation3 + $0xb0] ss:$12 sps:$4 sm:$0xff]  }
  0x3f   :  { %928 = vmatprep.subr.bf16.mxu1 %v1671_v56  ;;  %v1699_v56 = vld [vmem:[#allocation3 + $0x230] ss:$12 sps:$4 sm:$0xff]  }
  0x41   :  { %888 = vmatpush2.bf16.msra.mxu0 %v1666_v57 }
  0x42   :  { %929 = vmatpush2.bf16.msra.mxu1 %v1669_v58  ;;  %889 = vmatprep.subr.bf16.mxu0 %v1674_v59  ;;  %v1700_v59 = vld [vmem:[#allocation3 + $0x158] ss:$12 sps:$4 sm:$0xff]  }
  0x43   :  { %930 = vmatprep.subr.bf16.mxu1 %v1677_v60  ;;  %v1701_v60 = vld [vmem:[#allocation3 + $0x2d8] ss:$12 sps:$4 sm:$0xff]  }
  0x45   :  { %890 = vmatpush2.bf16.msra.mxu0 %v1672_v61  ;;  %v1702_v61 = vld [vmem:[#allocation3 + $0x98] ss:$12 sps:$4 sm:$0xff]  }
  0x46   :  { %931 = vmatpush2.bf16.msra.mxu1 %v1675_v62  ;;  %891 = vmatprep.subr.bf16.mxu0 %v1680_v63  ;;  %v1703_v62 = vld [vmem:[#allocation3 + $0x218] ss:$12 sps:$4 sm:$0xff]   ;;  %v1704_v63 = vld [vmem:[#allocation3 + $0x140] ss:$12 sps:$4 sm:$0xff]  }
  0x47   :  { %932 = vmatprep.subr.bf16.mxu1 %v1683_v1  ;;  %v1705_v1 = vld [vmem:[#allocation3 + $0x2c0] ss:$12 sps:$4 sm:$0xff]  }
  0x49   :  { %892 = vmatpush2.bf16.msra.mxu0 %v1678_v2  ;;  %v1706_v2 = vld [vmem:[#allocation3 + $0x80] ss:$12 sps:$4 sm:$0xff]  }
  0x4a   :  { %933 = vmatpush2.bf16.msra.mxu1 %v1681_v3  ;;  %893 = vmatprep.subr.bf16.mxu0 %v1686_v4  ;;  %v1707_v3 = vld [vmem:[#allocation3 + $0x200] ss:$12 sps:$4 sm:$0xff]   ;;  %v1708_v4 = vld [vmem:[#allocation3 + $0x128] ss:$12 sps:$4 sm:$0xff]  }
  0x4b   :  { %934 = vmatprep.subr.bf16.mxu1 %v1689_v5  ;;  %v1709_v5 = vld [vmem:[#allocation3 + $0x2a8] ss:$12 sps:$4 sm:$0xff]  }
  0x4d   :  { %894 = vmatpush2.bf16.msra.mxu0 %v1684_v6  ;;  %v1710_v6 = vld [vmem:[#allocation3 + $0x68] ss:$12 sps:$4 sm:$0xff]  }
  0x4e   :  { %935 = vmatpush2.bf16.msra.mxu1 %v1687_v7  ;;  %895 = vmatprep.subr.bf16.mxu0 %v1692_v8  ;;  %v1711_v7 = vld [vmem:[#allocation3 + $0x1e8] ss:$12 sps:$4 sm:$0xff]   ;;  %v1712_v8 = vld [vmem:[#allocation3 + $0x110] ss:$12 sps:$4 sm:$0xff]  }
  0x4f   :  { %936 = vmatprep.subr.bf16.mxu1 %v1695_v9  ;;  %v1713_v9 = vld [vmem:[#allocation3 + $0x290] ss:$12 sps:$4 sm:$0xff]  }
  0x51   :  { %896 = vmatpush2.bf16.msra.mxu0 %v1690_v10  ;;  %v1714_v10 = vld [vmem:[#allocation3 + $0x50] ss:$12 sps:$4 sm:$0xff]  }
  0x52   :  { %937 = vmatpush2.bf16.msra.mxu1 %v1693_v11  ;;  %1495 = vmatprep.subr.bf16.mxu0 %v1696_v12  ;;  %v1715_v11 = vld [vmem:[#allocation3 + $0x1d0] ss:$12 sps:$4 sm:$0xff]   ;;  %v1716_v12 = vld [vmem:[#allocation3 + $0xf8] ss:$12 sps:$4 sm:$0xff]  }
  0x53   :  { %1517 = vmatprep.subr.bf16.mxu1 %v1697_v13  ;;  %v1717_v13 = vld [vmem:[#allocation3 + $0x278] ss:$12 sps:$4 sm:$0xff]  }
  0xd4   :  { %v111_v33 = vpop.f32.mrf.mxu0 }
  0xd5   :  { %v152_v35 = vpop.f32.mrf.mxu1  ;;  %v159_v37 = vpack.c.bf16 %v111_v33, %v111_v33  ;;  %v1733_v33 = vld [vmem:[%s1974_s6 + $0x28] sm:$0xff]  }
  0xd6   :  { %v161_v38 = vpack.c.bf16 %v152_v35, %v152_v35  ;;  %v113_v41 = vpop.f32.mrf.mxu0  ;;  %v1735_v35 = vld [vmem:[%s1974_s6 + $0x20] sm:$0xff]  }
  0xd7   :  { %v154_v42 = vpop.f32.mrf.mxu1  ;;  %v160_v43 = vpack.c.bf16 %v113_v41, %v113_v41  ;;  %v217_v45 = vadd.bf16 %v195_v34, %v159_v37  ;;  %v1734_v34 = vld [vmem:[%s1974_s6 + $0x60] sm:$0xff]   ;;  %v1737_v37 = vld [vmem:[%s1974_s6 + $0x18] sm:$0xff]   ;;  %v1741_v41 = vld [vmem:[%s1974_s6 + $0x8] sm:$0xff]  }
  0xd8   :  { %v162_v44 = vpack.c.bf16 %v154_v42, %v154_v42  ;;  %v219_v46 = vadd.bf16 %v209_v36, %v161_v38  ;;  %v115_v47 = vpop.f32.mrf.mxu0  ;;  %v1736_v36 = vld [vmem:[%s1974_s6 + $0x58] sm:$0xff]   ;;  %v1738_v38 = vld [vmem:[%s1974_s6 + $0x50] sm:$0xff]   ;;  %v1742_v42 = vld [vmem:[%s1974_s6 + $0x40] sm:$0xff]  }
  0xd9   :  { %v156_v48 = vpop.f32.mrf.mxu1  ;;  %v218_v49 = vadd.bf16 %v202_v39, %v160_v43  ;;  %v1864_v57 = vmax.bf16 %v1779_v0, %v217_v45  ;;  %v1739_v39 = vld [vmem:[%s1974_s6 + $0x10] sm:$0xff]   ;;  %v1743_v43 = vld [vmem:[%s1974_s6] sm:$0xff]   ;;  %v1780_v45 = vmov 0.0   ;;  %v1746_v47 = vld [vmem:[%s1974_s6 + $0xa8] sm:$0xff]  }
  0xda   :  { %v220_v50 = vadd.bf16 %v216_v40, %v162_v44  ;;  %v116_v51 = vpop.f32.mrf.mxu0  ;;  %v1867_v58 = vmax.bf16 %v1779_v0, %v219_v46  ;;  %v1740_v40 = vld [vmem:[%s1974_s6 + $0x48] sm:$0xff]   ;;  %v1744_v44 = vld [vmem:[%s1974_s6 + $0xb8] sm:$0xff]   ;;  %v1745_v46 = vld [vmem:[%s1974_s6 + $0xb0] sm:$0xff]  }
  0xdb   :  { %v157_v52 = vpop.f32.mrf.mxu1  ;;  %v222_v53 = vmax.bf16 %v1779_v0, %v218_v49  ;;  %v1747_v48 = vld [vmem:[%s1974_s6 + $0xa0] sm:$0xff]   ;;  %v1748_v49 = vld [vmem:[%s1974_s6 + $0x98] sm:$0xff]   ;;  %v1750_v51 = vld [vmem:[%s1974_s6 + $0x88] sm:$0xff]  }
  0xdc   :  { %v224_v54 = vmax.bf16 %v1779_v0, %v220_v50  ;;  %v1749_v50 = vld [vmem:[%s1974_s6 + $0x90] sm:$0xff]   ;;  %v1751_v52 = vld [vmem:[%s1974_s6 + $0x80] sm:$0xff]  }
  0xdd   :  { %897 = vmatprep.mubr.bf16.mxu0 %v222_v53 }
  0xde   :  { %938 = vmatprep.mubr.bf16.mxu1 %v224_v54  ;;  %898 = vmatmul.mubr.bf16.vlgmr.msra.gmra.mxu0 %v1864_v57 }
  0xdf   :  { %939 = vmatmul.mubr.bf16.vlgmr.msra.gmra.mxu1 %v1867_v58  ;;  %1496 = vmatpush3.bf16.msra.mxu0 %v1698_v55 }
  0xe0   :  { %1518 = vmatpush3.bf16.msra.mxu1 %v1699_v56  ;;  %979 = vmatprep.mubr.bf16.mxu0 %v222_v53  ;;  %v1030_v53 = vld [vmem:[%s1973_s5] sm:$0x7] }
  0xe1   :  { %1019 = vmatprep.mubr.bf16.mxu1 %v224_v54  ;;  %1497 = vmatprep.subr.bf16.mxu0 %v1700_v59  ;;  %v1035_v54 = vrot.slane %v1030_v53, %v1844_v16  ;;  %v1039_v55 = vrot.slane %v1030_v53, %v171_v19 }
  0xe2   :  { %1519 = vmatprep.subr.bf16.mxu1 %v1701_v60 }
  0xe3   :  { %1498 = vmatpush3.bf16.msra.mxu0 %v1702_v61  ;;  %v1047_v56 = vpack.c.bf16 %v1035_v54, %v1035_v54 }
  0xe4   :  { %1520 = vmatpush3.bf16.msra.mxu1 %v1703_v62  ;;  %1499 = vmatprep.subr.bf16.mxu0 %v1704_v63 }
  0xe5   :  { %1521 = vmatprep.subr.bf16.mxu1 %v1705_v1 }
  0xe7   :  { %1500 = vmatpush3.bf16.msra.mxu0 %v1706_v2 }
  0xe8   :  { %1522 = vmatpush3.bf16.msra.mxu1 %v1707_v3  ;;  %1501 = vmatprep.subr.bf16.mxu0 %v1708_v4 }
  0xe9   :  { %1523 = vmatprep.subr.bf16.mxu1 %v1709_v5 }
  0xeb   :  { %1502 = vmatpush3.bf16.msra.mxu0 %v1710_v6 }
  0xec   :  { %1524 = vmatpush3.bf16.msra.mxu1 %v1711_v7  ;;  %1503 = vmatprep.subr.bf16.mxu0 %v1712_v8 }
  0xed   :  { %1525 = vmatprep.subr.bf16.mxu1 %v1713_v9 }
  0xef   :  { %1504 = vmatpush3.bf16.msra.mxu0 %v1714_v10 }
  0xf0   :  { %1526 = vmatpush3.bf16.msra.mxu1 %v1715_v11  ;;  %1505 = vmatprep.subr.bf16.mxu0 %v1716_v12 }
  0xf1   :  { %1527 = vmatprep.subr.bf16.mxu1 %v1717_v13 }
  0xf3   :  { %1506 = vmatpush3.bf16.msra.mxu0 %v1718_v14  ;;  %v1043_v14 = vrot.slane %v1030_v53, %v175_v17 }
  0xf4   :  { %1528 = vmatpush3.bf16.msra.mxu1 %v1719_v18  ;;  %1507 = vmatprep.subr.bf16.mxu0 %v1720_v20 }
  0xf5   :  { %1529 = vmatprep.subr.bf16.mxu1 %v1721_v21  ;;  %v1049_v18 = vpack.c.bf16 %v1043_v14, %v1043_v14 }
  0xf7   :  { %1508 = vmatpush3.bf16.msra.mxu0 %v1722_v22  ;;  %v1065_v22 = vpack.i.b16 %v1049_v18, %v1049_v18 }
  0xf8   :  { %1530 = vmatpush3.bf16.msra.mxu1 %v1723_v23  ;;  %1509 = vmatprep.subr.bf16.mxu0 %v1724_v24 }
  0xf9   :  { %1531 = vmatprep.subr.bf16.mxu1 %v1725_v25 }
  0xfb   :  { %1510 = vmatpush3.bf16.msra.mxu0 %v1726_v26 }
  0xfc   :  { %1532 = vmatpush3.bf16.msra.mxu1 %v1727_v27  ;;  %1539 = vmatprep.subr.bf16.mxu0 %v1728_v28 }
  0xfd   :  { %1570 = vmatprep.subr.bf16.mxu1 %v1780_v45 }
  0xfe   :  { %980 = vmatmul.mubr.bf16.vlgmr.msra.gmra.mxu0 %v1864_v57  ;;  %v1048_v57 = vpack.c.bf16 %v1039_v55, %v1039_v55 }
  0xff   :  { %1020 = vmatmul.mubr.bf16.vlgmr.msra.gmra.mxu1 %v1867_v58  ;;  %1540 = vmatpush3.bf16.msra.mxu0 %v1729_v29  ;;  %v1051_v58 = vpack.i.b16 %v1047_v56, %v1047_v56 }
 0x100   :  { %1541 = vmatprep.subr.bf16.mxu0 %v1730_v30  ;;  %1571 = vmatpush3.bf16.msra.mxu1 %v1744_v44  ;;  %v1058_v59 = vpack.i.b16 %v1048_v57, %v1048_v57  ;;  %v1070_v30 = vrot.slane %v1065_v22, %v1844_v16 }
 0x101   :  { %1572 = vmatprep.subr.bf16.mxu1 %v1780_v45  ;;  %1586 = vmatprep.mubr.msk.bf16.mxu1 %vm1781_vm2, %v1780_v45  ;;  %v1056_v63 = vrot.slane %v1051_v58, %v1844_v16 }
 0x102   :  { %v1063_v5 = vrot.slane %v1058_v59, %v1844_v16 }
 0x103   :  { %1542 = vmatpush3.bf16.msra.mxu0 %v1731_v31 }
 0x104   :  { %1543 = vmatprep.subr.bf16.mxu0 %v1732_v32  ;;  %1573 = vmatpush3.bf16.msra.mxu1 %v1745_v46 }
 0x105   :  { %1574 = vmatprep.subr.bf16.mxu1 %v1780_v45 }
 0x107   :  { %1544 = vmatpush3.bf16.msra.mxu0 %v1733_v33 }
 0x108   :  { %1545 = vmatprep.subr.bf16.mxu0 %v1734_v34  ;;  %1575 = vmatpush3.bf16.msra.mxu1 %v1746_v47 }
 0x109   :  { %1576 = vmatprep.subr.bf16.mxu1 %v1780_v45 }
 0x10b   :  { %1546 = vmatpush3.bf16.msra.mxu0 %v1735_v35 }
 0x10c   :  { %1547 = vmatprep.subr.bf16.mxu0 %v1736_v36  ;;  %1577 = vmatpush3.bf16.msra.mxu1 %v1747_v48 }
 0x10d   :  { %1578 = vmatprep.subr.bf16.mxu1 %v1780_v45 }
 0x10f   :  { %1548 = vmatpush3.bf16.msra.mxu0 %v1737_v37 }
 0x110   :  { %1549 = vmatprep.subr.bf16.mxu0 %v1738_v38  ;;  %1579 = vmatpush3.bf16.msra.mxu1 %v1748_v49 }
 0x111   :  { %1580 = vmatprep.subr.bf16.mxu1 %v1780_v45 }
 0x113   :  { %1550 = vmatpush3.bf16.msra.mxu0 %v1739_v39  ;;  %v1470_v39 = vld [vmem:[%s1975_s7] ss:$0 sm:$0xff] }
 0x114   :  { %1551 = vmatprep.subr.bf16.mxu0 %v1740_v40  ;;  %1581 = vmatpush3.bf16.msra.mxu1 %v1749_v50 }
 0x115   :  { %1582 = vmatprep.subr.bf16.mxu1 %v1780_v45 }
 0x117   :  { %1552 = vmatpush3.bf16.msra.mxu0 %v1741_v41 }
 0x118   :  { %1553 = vmatprep.subr.bf16.mxu0 %v1742_v42  ;;  %1583 = vmatpush3.bf16.msra.mxu1 %v1750_v51 }
 0x119   :  { %1584 = vmatprep.subr.bf16.mxu1 %v1780_v45 }
 0x11b   :  { %1554 = vmatpush3.bf16.msra.mxu0 %v1743_v43 }
 0x11c   :  { %1585 = vmatpush3.bf16.msra.mxu1 %v1751_v52 }
 0x19e   :  { %v899_v60 = vpop.f32.mrf.mxu0 }
 0x19f   :  { %v940_v61 = vpop.f32.mrf.mxu1 }
 0x1a0   :  { %v941_v62 = vadd.f32 %v940_v61, %v899_v60  ;;  %v901_v1 = vpop.f32.mrf.mxu0 }
 0x1a1   :  { %v942_v2 = vpop.f32.mrf.mxu1 }
 0x1a2   :  { %v1027_v3 = vpack.c.bf16 %v941_v62, %v941_v62  ;;  %v943_v4 = vadd.f32 %v942_v2, %v901_v1  ;;  %v903_v6 = vpop.f32.mrf.mxu0 }
 0x1a3   :  { %v944_v7 = vpop.f32.mrf.mxu1 }
 0x1a4   :  { %v1028_v8 = vpack.c.bf16 %v943_v4, %v943_v4  ;;  %v1071_v9 = vadd.bf16 %v1056_v63, %v1027_v3  ;;  %v904_v19 = vpop.f32.mrf.mxu0 }
 0x1a5   :  { %v945_v10 = vpop.f32.mrf.mxu1 }
 0x1a6   :  { %v1072_v11 = vadd.bf16 %v1063_v5, %v1028_v8  ;;  %v1074_v13 = vmax.bf16 %v1779_v0, %v1071_v9 }
 0x1a8   :  { %v1075_v12 = vmax.bf16 %v1779_v0, %v1072_v11 }
 0x1aa   :  { %1308 = vmatprep.mubr.bf16.mxu0 %v1075_v12 }
 0x1ab   :  { %1309 = vmatmul.mubr.bf16.vlgmr.msra.gmra.mxu0 %v1074_v13 }
 0x1be   :  { %v1511_v20 = vpop.f32.mrf.mxu0 }
 0x1bf   :  { %v1533_v21 = vpop.f32.mrf.mxu1 }
 0x1c0   :  { %v1512_v23 = vpop.f32.mrf.mxu0 }
 0x1c1   :  { %v1534_v24 = vpop.f32.mrf.mxu1  ;;  %v1513_v25 = vadd.f32 %v1512_v23, %v1511_v20 }
 0x1c2   :  { %v1535_v26 = vadd.f32 %v1534_v24, %v1533_v21  ;;  %v1514_v27 = vpop.f32.mrf.mxu0 }
 0x1c3   :  { %v1536_v28 = vpop.f32.mrf.mxu1 }
 0x1c4   :  { %v1022_v29 = vadd.f32 %v1535_v26, %v1513_v25  ;;  %v1515_v31 = vpop.f32.mrf.mxu0 }
 0x1c5   :  { %v1537_v32 = vpop.f32.mrf.mxu1 }
 0x1c6   :  { %v1029_v33 = vpack.c.bf16 %v1022_v29, %v1022_v29 }
 0x1c8   :  { %v1073_v34 = vadd.bf16 %v1070_v30, %v1029_v33 }
 0x1ca   :  { %v1076_v15 = vmax.bf16 %v1779_v0, %v1073_v34  ;;  %v1357_v0 = vstv %s1968_s0 }
 0x1cc   :  { %1587 = vmatmul.mubr.bf16.vlgmr.msra.gmra.mxu1 %v1076_v15 }
 0x26b   :  { %v1555_v17 = vpop.f32.mrf.mxu0 }
 0x26d   :  { %v1556_v35 = vpop.f32.mrf.mxu0 }
 0x26e   :  { %v1557_v38 = vadd.f32 %v1556_v35, %v1555_v17 }
 0x26f   :  { %v1558_v36 = vpop.f32.mrf.mxu0 }
 0x270   :  { %v1311_v40 = vadd.f32 %v1557_v38, %v1470_v39 }
 0x271   :  { %v1559_v37 = vpop.f32.mrf.mxu0 }
 0x28c   :  { %v1350_v41 = vpop.f32.mrf.mxu1 }
 0x28d   :  { %v1351_v42 = vadd.f32 %v1350_v41, %v1311_v40 }
 0x28e   :  { %v1588_v16 = vpop.f32.mrf.mxu1 }
 0x28f   :  { %1752 = vtanh.f32 %v1351_v42 }
 0x290   :  { %v1353_v43 = vpop.f32.mrf.mxu1 }
 0x292   :  { %v1589_v44 = vpop.f32.mrf.mxu1 }
 0x29c   :  { %v1753_v45 = vpop.eup %1752 }
 0x29d   :  { %v1358_v46 = vmul.f32 %v1753_v45, %v1357_v0 }
 0x29f   :  { %1360 = vst.msk [vmem:[%s1976_s8] sm:$0xff] %vm1359_vm3, %v1358_v46 }
 0x2a0   :  { %1365 = vsyncpa [#allocation4], 1 }

</bundles_post_ra>
